<compile_context>
chip_gen: v7x
topology: tpu7x:2x2x1
jax: 0.10.0
libtpu: 0.0.40
codegen_flags: <defaults>
</compile_context>

<pallas_src>
import functools
import math

import jax
import jax.numpy as jnp
from jax.experimental import pallas as pl
from jax.experimental.pallas import tpu as pltpu


def _layer_norm(x, gamma, beta, eps=1e-5):
    mean = jnp.mean(x, axis=-1, keepdims=True)
    var = jnp.mean((x - mean) ** 2, axis=-1, keepdims=True)
    return (x - mean) * jax.lax.rsqrt(var + eps) * gamma + beta


def _cross_attn_kernel(
    # per-block activations
    q_ref, k_ref, v_ref,              # (bn, L, E) f32, (bn, S, E) mxu, (bn, S, E) mxu
    # packed weights
    wproj_ref,                        # (4, E, E): wq*scale, wk, wv, wo  (mxu dtype)
    vecs_ref,                         # (9, E): bq*scale,bk,bv,bo,g1,be1,g2,be2,bf2 (f32)
    w1_ref, bf1_ref, w2_ref,          # (E, H) mxu, (1, H) f32, (H, E) mxu
    # outputs
    out_ref, attnw_ref,               # (bn, L, E), (bn, L, S)
    *, num_heads, mxu_dtype,
):
    bn, L, E = q_ref.shape
    S = k_ref.shape[1]
    H = num_heads
    Dh = E // H

    # flatten batch rows for the projections / FFN
    q_in = q_ref[...].astype(jnp.float32).reshape(bn * L, E)   # f32 (needed for residual)
    k_in = k_ref[...].reshape(bn * S, E)                       # already mxu dtype
    v_in = v_ref[...].reshape(bn * S, E)                       # already mxu dtype

    vecs = vecs_ref[...].astype(jnp.float32)
    bq, bk, bv, bo = vecs[0:1], vecs[1:2], vecs[2:3], vecs[3:4]
    g1, be1, g2, be2, bf2 = vecs[4:5], vecs[5:6], vecs[6:7], vecs[7:8], vecs[8:9]

    wq, wk, wv, wo = wproj_ref[0], wproj_ref[1], wproj_ref[2], wproj_ref[3]

    # input projections: y = x @ W^T + b (weights pre-transposed to (in, out));
    # the attention scale 1/sqrt(Dh) is already folded into wq / bq.
    q = jnp.dot(q_in.astype(mxu_dtype), wq, preferred_element_type=jnp.float32) + bq
    k = jnp.dot(k_in, wk, preferred_element_type=jnp.float32) + bk
    v = jnp.dot(v_in, wv, preferred_element_type=jnp.float32) + bv

    # head-batched attention: collapse (batch, head) into one batch dim
    qh = q.reshape(bn, L, H, Dh).transpose(0, 2, 1, 3).reshape(bn * H, L, Dh)
    kh = k.reshape(bn, S, H, Dh).transpose(0, 2, 1, 3).reshape(bn * H, S, Dh)
    vh = v.reshape(bn, S, H, Dh).transpose(0, 2, 1, 3).reshape(bn * H, S, Dh)

    scores = jnp.einsum('bld,bsd->bls', qh.astype(mxu_dtype), kh.astype(mxu_dtype),
                        preferred_element_type=jnp.float32)      # (bn*H, L, S)
    scores = scores - jnp.max(scores, axis=-1, keepdims=True)
    p = jnp.exp(scores)
    p = p * pl.reciprocal(jnp.sum(p, axis=-1, keepdims=True), approx=True)

    oh = jnp.einsum('bls,bsd->bld', p.astype(mxu_dtype), vh.astype(mxu_dtype),
                    preferred_element_type=jnp.float32)          # (bn*H, L, Dh)
    attn_out = oh.reshape(bn, H, L, Dh).transpose(0, 2, 1, 3).reshape(bn * L, E)

    # averaged attention weights (PyTorch default average_attn_weights=True);
    # fold 1/H into a multiply instead of a divide.
    attnw = p.reshape(bn, H, L, S).sum(axis=1) * (1.0 / H)
    attnw_ref[...] = attnw.astype(attnw_ref.dtype)

    # output projection
    attention = jnp.dot(attn_out.astype(mxu_dtype), wo,
                        preferred_element_type=jnp.float32) + bo

    # x = dropout(norm1(attention + query))  -- dropout = identity (eval)
    x = _layer_norm(attention + q_in, g1, be1)

    # feed forward: Linear -> ReLU -> Linear
    h1 = jnp.dot(x.astype(mxu_dtype), w1_ref[...],
                 preferred_element_type=jnp.float32) + bf1_ref[...].astype(jnp.float32)
    h1 = jnp.maximum(h1, 0.0)
    ff = jnp.dot(h1.astype(mxu_dtype), w2_ref[...],
                 preferred_element_type=jnp.float32) + bf2

    # out = dropout(norm2(ff + x))
    out = _layer_norm(ff + x, g2, be2)
    out_ref[...] = out.reshape(bn, L, E).astype(out_ref.dtype)


def cross_attention_block(value, key, query, params, *, num_heads,
                          block_n=None, mxu_dtype=jnp.bfloat16,
                          vmem_limit_bytes=None):
    """value/key: (S, N, E), query: (L, N, E) -> (out (L, N, E), attn_w (N, L, S))."""
    L, N, E = query.shape
    S = key.shape[0]
    assert E % num_heads == 0, "embed_size must be divisible by num_heads"
    H_ff = params["w1"].shape[1]
    scale = 1.0 / math.sqrt(E // num_heads)

    if block_n is None:
        # Whole batch in one grid step (best for 1-TC v5e/v6e at these sizes).
        # On v7x with larger N, pass block_n = cdiv(N, 2) to keep both
        # TensorCores busy via the "parallel" grid axis.
        block_n = N
    assert N % block_n == 0, "batch must be divisible by block_n"
    num_blocks = N // block_n

    # batch-first for the kernel; key/value go down in the MXU dtype (they are
    # only ever consumed by bf16 matmuls), query stays f32 for the residual.
    q_b = jnp.transpose(query, (1, 0, 2))                      # (N, L, E) f32
    k_b = jnp.transpose(key, (1, 0, 2)).astype(mxu_dtype)      # (N, S, E) bf16
    v_b = jnp.transpose(value, (1, 0, 2)).astype(mxu_dtype)    # (N, S, E) bf16

    # pack weights: 4 projection matrices in one ref (bf16 for the MXU),
    # 9 small (1, E) vectors in one ref (f32 for exact bias/LN math).
    # The attention scale is folded into the query projection (weight prep,
    # one tiny (E,E) multiply in the wrapper).
    w_proj = jnp.stack(
        [params["wq"] * scale, params["wk"], params["wv"], params["wo"]]
    ).astype(mxu_dtype)                                        # (4, E, E)
    vecs = jnp.concatenate(
        [params["bq"] * scale, params["bk"], params["bv"], params["bo"],
         params["g1"], params["be1"], params["g2"], params["be2"],
         params["bf2"]], axis=0).astype(jnp.float32)           # (9, E)
    w1 = params["w1"].astype(mxu_dtype)                        # (E, H_ff)
    w2 = params["w2"].astype(mxu_dtype)                        # (H_ff, E)
    bf1 = params["bf1"].astype(jnp.float32)                    # (1, H_ff)

    grid_spec = pltpu.PrefetchScalarGridSpec(
        num_scalar_prefetch=0,
        grid=(num_blocks,),
        in_specs=[
            pl.BlockSpec((block_n, L, E), lambda b: (b, 0, 0)),
            pl.BlockSpec((block_n, S, E), lambda b: (b, 0, 0)),
            pl.BlockSpec((block_n, S, E), lambda b: (b, 0, 0)),
            pl.BlockSpec((4, E, E), lambda b: (0, 0, 0)),
            pl.BlockSpec((9, E), lambda b: (0, 0)),
            pl.BlockSpec((E, H_ff), lambda b: (0, 0)),
            pl.BlockSpec((1, H_ff), lambda b: (0, 0)),
            pl.BlockSpec((H_ff, E), lambda b: (0, 0)),
        ],
        out_specs=[
            pl.BlockSpec((block_n, L, E), lambda b: (b, 0, 0)),
            pl.BlockSpec((block_n, L, S), lambda b: (b, 0, 0)),
        ],
    )

    out_b, attnw = pl.pallas_call(
        functools.partial(_cross_attn_kernel, num_heads=num_heads,
                          mxu_dtype=mxu_dtype),
        grid_spec=grid_spec,
        out_shape=(
            jax.ShapeDtypeStruct((N, L, E), query.dtype),
            jax.ShapeDtypeStruct((N, L, S), query.dtype),
        ),
        compiler_params=pltpu.CompilerParams(
            dimension_semantics=("parallel",),
            vmem_limit_bytes=vmem_limit_bytes),
    )(q_b, k_b, v_b, w_proj, vecs, w1, bf1, w2)

    out = jnp.transpose(out_b, (1, 0, 2))   # back to (L, N, E)
    return out, attnw


def init_params(key, embed_size, forward_expansion):
    """Deterministic synthetic parameters, matching PyTorch module shapes.

    PyTorch Linear weights are (out, in); we store them transposed (in, out)
    so the kernel computes x @ W directly.
    """
    E = embed_size
    H = forward_expansion * E
    ks = jax.random.split(key, 8)
    s = 0.02
    params = {
        # in_proj_weight (3E, E) split into q/k/v, transposed to (E, E)
        "wq": jax.random.normal(ks[0], (E, E), jnp.float32) * s,
        "wk": jax.random.normal(ks[1], (E, E), jnp.float32) * s,
        "wv": jax.random.normal(ks[2], (E, E), jnp.float32) * s,
        "bq": jax.random.normal(ks[3], (1, E), jnp.float32) * s,
        "bk": jax.random.normal(ks[4], (1, E), jnp.float32) * s,
        "bv": jax.random.normal(ks[5], (1, E), jnp.float32) * s,
        # out_proj: Linear(E, E)
        "wo": jax.random.normal(ks[6], (E, E), jnp.float32) * s,
        "bo": jnp.zeros((1, E), jnp.float32),
        # LayerNorms
        "g1": jnp.ones((1, E), jnp.float32),
        "be1": jnp.zeros((1, E), jnp.float32),
        "g2": jnp.ones((1, E), jnp.float32),
        "be2": jnp.zeros((1, E), jnp.float32),
        # feed_forward: Linear(E, 4E) -> ReLU -> Linear(4E, E)
        "w1": jax.random.normal(ks[7], (E, H), jnp.float32) * s,
        "bf1": jnp.zeros((1, H), jnp.float32),
        "w2": jax.random.normal(jax.random.fold_in(key, 99), (H, E), jnp.float32) * s,
        "bf2": jnp.zeros((1, E), jnp.float32),
    }
    return params


if __name__ == "__main__":
    embed_size = 32
    heads = 4
    forward_expansion = 4
    L = 8   # target (query) sequence length
    S = 8   # source (key/value) sequence length
    N = 2   # batch

    root = jax.random.PRNGKey(0)
    k_v, k_k, k_q, k_p = jax.random.split(root, 4)

    value = jax.random.normal(k_v, (S, N, embed_size), jnp.float32)
    key_t = jax.random.normal(k_k, (S, N, embed_size), jnp.float32)
    query = jax.random.normal(k_q, (L, N, embed_size), jnp.float32)

    params = init_params(k_p, embed_size, forward_expansion)

    out, attn_w = cross_attention_block(value, key_t, query, params,
                                        num_heads=heads)
    jax.block_until_ready((out, attn_w))

    assert out.shape == (L, N, embed_size)
    assert attn_w.shape == (N, L, S)
    print("KERNEL_OK")
</pallas_src>

<mosaic_0001>
module attributes {stable_mosaic.version = 11 : i64} {
  func.func @_cross_attn_kernel(%arg0: i32, %arg1: memref<2x8x32xf32, #tpu.memory_space<vmem>>, %arg2: memref<2x8x32xbf16, #tpu.memory_space<vmem>>, %arg3: memref<2x8x32xbf16, #tpu.memory_space<vmem>>, %arg4: memref<4x32x32xbf16, #tpu.memory_space<vmem>>, %arg5: memref<9x32xf32, #tpu.memory_space<vmem>>, %arg6: memref<32x128xbf16, #tpu.memory_space<vmem>>, %arg7: memref<1x128xf32, #tpu.memory_space<vmem>>, %arg8: memref<128x32xbf16, #tpu.memory_space<vmem>>, %arg9: memref<2x8x32xf32, #tpu.memory_space<vmem>>, %arg10: memref<2x8x8xf32, #tpu.memory_space<vmem>>) attributes {dimension_semantics = [#tpu.dimension_semantics<parallel>], iteration_bounds = array<i64: 1>, scalar_prefetch = 0 : i64, scratch_operands = 0 : i64, tpu.core_type = #tpu.core_type<tc>, window_params = [{transform_indices = @transform_0, window_bounds = array<i64: 2, 8, 32>}, {transform_indices = @transform_1, window_bounds = array<i64: 2, 8, 32>}, {transform_indices = @transform_2, window_bounds = array<i64: 2, 8, 32>}, {pipeline_mode = #tpu.pipeline_mode<synchronous>, transform_indices = @transform_3, window_bounds = array<i64: 4, 32, 32>}, {pipeline_mode = #tpu.pipeline_mode<synchronous>, transform_indices = @transform_4, window_bounds = array<i64: 9, 32>}, {pipeline_mode = #tpu.pipeline_mode<synchronous>, transform_indices = @transform_5, window_bounds = array<i64: 32, 128>}, {pipeline_mode = #tpu.pipeline_mode<synchronous>, transform_indices = @transform_6, window_bounds = array<i64: 1, 128>}, {pipeline_mode = #tpu.pipeline_mode<synchronous>, transform_indices = @transform_7, window_bounds = array<i64: 128, 32>}, {transform_indices = @transform_8, window_bounds = array<i64: 2, 8, 32>}, {transform_indices = @transform_9, window_bounds = array<i64: 2, 8, 8>}]} {
    %c0 = arith.constant 0 : index
    %c0_0 = arith.constant 0 : index
    %c0_1 = arith.constant 0 : index
    %0 = vector.load %arg1[%c0, %c0_0, %c0_1] : memref<2x8x32xf32, #tpu.memory_space<vmem>>, vector<2x8x32xf32>
    %1 = vector.shape_cast %0 : vector<2x8x32xf32> to vector<16x32xf32>
    %c0_2 = arith.constant 0 : index
    %c0_3 = arith.constant 0 : index
    %c0_4 = arith.constant 0 : index
    %2 = vector.load %arg2[%c0_2, %c0_3, %c0_4] : memref<2x8x32xbf16, #tpu.memory_space<vmem>>, vector<2x8x32xbf16>
    %3 = vector.shape_cast %2 : vector<2x8x32xbf16> to vector<16x32xbf16>
    %c0_5 = arith.constant 0 : index
    %c0_6 = arith.constant 0 : index
    %c0_7 = arith.constant 0 : index
    %4 = vector.load %arg3[%c0_5, %c0_6, %c0_7] : memref<2x8x32xbf16, #tpu.memory_space<vmem>>, vector<2x8x32xbf16>
    %5 = vector.shape_cast %4 : vector<2x8x32xbf16> to vector<16x32xbf16>
    %c0_8 = arith.constant 0 : index
    %c0_9 = arith.constant 0 : index
    %6 = vector.load %arg5[%c0_8, %c0_9] : memref<9x32xf32, #tpu.memory_space<vmem>>, vector<9x32xf32>
    %7 = vector.extract_strided_slice %6 {offsets = [0, 0], sizes = [1, 32], strides = [1, 1]} : vector<9x32xf32> to vector<1x32xf32>
    %8 = vector.extract_strided_slice %6 {offsets = [1, 0], sizes = [1, 32], strides = [1, 1]} : vector<9x32xf32> to vector<1x32xf32>
    %9 = vector.extract_strided_slice %6 {offsets = [2, 0], sizes = [1, 32], strides = [1, 1]} : vector<9x32xf32> to vector<1x32xf32>
    %10 = vector.extract_strided_slice %6 {offsets = [3, 0], sizes = [1, 32], strides = [1, 1]} : vector<9x32xf32> to vector<1x32xf32>
    %11 = vector.extract_strided_slice %6 {offsets = [4, 0], sizes = [1, 32], strides = [1, 1]} : vector<9x32xf32> to vector<1x32xf32>
    %12 = vector.extract_strided_slice %6 {offsets = [5, 0], sizes = [1, 32], strides = [1, 1]} : vector<9x32xf32> to vector<1x32xf32>
    %13 = vector.extract_strided_slice %6 {offsets = [6, 0], sizes = [1, 32], strides = [1, 1]} : vector<9x32xf32> to vector<1x32xf32>
    %14 = vector.extract_strided_slice %6 {offsets = [7, 0], sizes = [1, 32], strides = [1, 1]} : vector<9x32xf32> to vector<1x32xf32>
    %15 = vector.extract_strided_slice %6 {offsets = [8, 0], sizes = [1, 32], strides = [1, 1]} : vector<9x32xf32> to vector<1x32xf32>
    %c0_10 = arith.constant 0 : index
    %c0_11 = arith.constant 0 : index
    %c0_12 = arith.constant 0 : index
    %16 = vector.load %arg4[%c0_10, %c0_11, %c0_12] : memref<4x32x32xbf16, #tpu.memory_space<vmem>>, vector<1x32x32xbf16>
    %17 = vector.shape_cast %16 : vector<1x32x32xbf16> to vector<32x32xbf16>
    %c1 = arith.constant 1 : index
    %c0_13 = arith.constant 0 : index
    %c0_14 = arith.constant 0 : index
    %18 = vector.load %arg4[%c1, %c0_13, %c0_14] : memref<4x32x32xbf16, #tpu.memory_space<vmem>>, vector<1x32x32xbf16>
    %19 = vector.shape_cast %18 : vector<1x32x32xbf16> to vector<32x32xbf16>
    %c2 = arith.constant 2 : index
    %c0_15 = arith.constant 0 : index
    %c0_16 = arith.constant 0 : index
    %20 = vector.load %arg4[%c2, %c0_15, %c0_16] : memref<4x32x32xbf16, #tpu.memory_space<vmem>>, vector<1x32x32xbf16>
    %21 = vector.shape_cast %20 : vector<1x32x32xbf16> to vector<32x32xbf16>
    %c3 = arith.constant 3 : index
    %c0_17 = arith.constant 0 : index
    %c0_18 = arith.constant 0 : index
    %22 = vector.load %arg4[%c3, %c0_17, %c0_18] : memref<4x32x32xbf16, #tpu.memory_space<vmem>>, vector<1x32x32xbf16>
    %23 = vector.shape_cast %22 : vector<1x32x32xbf16> to vector<32x32xbf16>
    %24 = arith.truncf %1 : vector<16x32xf32> to vector<16x32xbf16>
    %cst = arith.constant dense<0.000000e+00> : vector<16x32xf32>
    %25 = tpu.matmul %24, %17, %cst {dimension_numbers = #tpu.dot_dimension_numbers<[1], [0], [0], [1], [0, 0, 1, 1], [], []>} : vector<16x32xbf16>, vector<32x32xbf16>, vector<16x32xf32> -> vector<16x32xf32>
    %26 = vector.broadcast %7 : vector<1x32xf32> to vector<16x32xf32>
    %27 = arith.addf %25, %26 : vector<16x32xf32>
    %cst_19 = arith.constant dense<0.000000e+00> : vector<16x32xf32>
    %28 = tpu.matmul %3, %19, %cst_19 {dimension_numbers = #tpu.dot_dimension_numbers<[1], [0], [0], [1], [0, 0, 1, 1], [], []>} : vector<16x32xbf16>, vector<32x32xbf16>, vector<16x32xf32> -> vector<16x32xf32>
    %29 = vector.broadcast %8 : vector<1x32xf32> to vector<16x32xf32>
    %30 = arith.addf %28, %29 : vector<16x32xf32>
    %cst_20 = arith.constant dense<0.000000e+00> : vector<16x32xf32>
    %31 = tpu.matmul %5, %21, %cst_20 {dimension_numbers = #tpu.dot_dimension_numbers<[1], [0], [0], [1], [0, 0, 1, 1], [], []>} : vector<16x32xbf16>, vector<32x32xbf16>, vector<16x32xf32> -> vector<16x32xf32>
    %32 = vector.broadcast %9 : vector<1x32xf32> to vector<16x32xf32>
    %33 = arith.addf %31, %32 : vector<16x32xf32>
    %34 = vector.shape_cast %27 : vector<16x32xf32> to vector<2x8x4x8xf32>
    %35 = tpu.transpose %34, [0, 2, 1, 3] : vector<2x8x4x8xf32> -> vector<2x4x8x8xf32>
    %36 = vector.shape_cast %35 : vector<2x4x8x8xf32> to vector<8x8x8xf32>
    %37 = vector.shape_cast %30 : vector<16x32xf32> to vector<2x8x4x8xf32>
    %38 = tpu.transpose %37, [0, 2, 1, 3] : vector<2x8x4x8xf32> -> vector<2x4x8x8xf32>
    %39 = vector.shape_cast %38 : vector<2x4x8x8xf32> to vector<8x8x8xf32>
    %40 = vector.shape_cast %33 : vector<16x32xf32> to vector<2x8x4x8xf32>
    %41 = tpu.transpose %40, [0, 2, 1, 3] : vector<2x8x4x8xf32> -> vector<2x4x8x8xf32>
    %42 = vector.shape_cast %41 : vector<2x4x8x8xf32> to vector<8x8x8xf32>
    %43 = arith.truncf %36 : vector<8x8x8xf32> to vector<8x8x8xbf16>
    %44 = arith.truncf %39 : vector<8x8x8xf32> to vector<8x8x8xbf16>
    "tpu.trace_start"() <{level = 10 : i32, message = "bld,bsd->bls"}> : () -> ()
    %cst_21 = arith.constant dense<0.000000e+00> : vector<8x8x8xf32>
    %45 = tpu.matmul %43, %44, %cst_21 {dimension_numbers = #tpu.dot_dimension_numbers<[2], [2], [1], [1], [0, 0, 0, 1, 1, 1], [0], [0]>} : vector<8x8x8xbf16>, vector<8x8x8xbf16>, vector<8x8x8xf32> -> vector<8x8x8xf32>
    "tpu.trace_stop"() : () -> ()
    %cst_22 = arith.constant dense<0xFF800000> : vector<8x8xf32>
    %46 = vector.multi_reduction <maximumf>, %45, %cst_22 [2] : vector<8x8x8xf32> to vector<8x8xf32>
    %47 = vector.shape_cast %46 : vector<8x8xf32> to vector<8x8x1xf32>
    %48 = vector.broadcast %47 : vector<8x8x1xf32> to vector<8x8x8xf32>
    %49 = arith.subf %45, %48 : vector<8x8x8xf32>
    %50 = math.exp %49 : vector<8x8x8xf32>
    %cst_23 = arith.constant dense<0.000000e+00> : vector<8x8xf32>
    %51 = vector.multi_reduction <add>, %50, %cst_23 [2] : vector<8x8x8xf32> to vector<8x8xf32>
    %52 = vector.shape_cast %51 : vector<8x8xf32> to vector<8x8x1xf32>
    %53 = tpu.reciprocal %52 {approx = true} : vector<8x8x1xf32> -> vector<8x8x1xf32>
    %54 = vector.broadcast %53 : vector<8x8x1xf32> to vector<8x8x8xf32>
    %55 = arith.mulf %50, %54 : vector<8x8x8xf32>
    %56 = arith.truncf %55 : vector<8x8x8xf32> to vector<8x8x8xbf16>
    %57 = arith.truncf %42 : vector<8x8x8xf32> to vector<8x8x8xbf16>
    "tpu.trace_start"() <{level = 10 : i32, message = "bls,bsd->bld"}> : () -> ()
    %cst_24 = arith.constant dense<0.000000e+00> : vector<8x8x8xf32>
    %58 = tpu.matmul %56, %57, %cst_24 {dimension_numbers = #tpu.dot_dimension_numbers<[2], [1], [1], [2], [0, 0, 0, 1, 1, 2], [0], [0]>} : vector<8x8x8xbf16>, vector<8x8x8xbf16>, vector<8x8x8xf32> -> vector<8x8x8xf32>
    "tpu.trace_stop"() : () -> ()
    %59 = vector.shape_cast %58 : vector<8x8x8xf32> to vector<2x4x8x8xf32>
    %60 = tpu.transpose %59, [0, 2, 1, 3] : vector<2x4x8x8xf32> -> vector<2x8x4x8xf32>
    %61 = vector.shape_cast %60 : vector<2x8x4x8xf32> to vector<16x32xf32>
    %62 = vector.shape_cast %55 : vector<8x8x8xf32> to vector<2x4x8x8xf32>
    %cst_25 = arith.constant dense<0.000000e+00> : vector<2x8x8xf32>
    %63 = vector.multi_reduction <add>, %62, %cst_25 [1] : vector<2x4x8x8xf32> to vector<2x8x8xf32>
    %cst_26 = arith.constant 2.500000e-01 : f32
    %64 = vector.broadcast %cst_26 : f32 to vector<2x8x8xf32>
    %65 = arith.mulf %63, %64 : vector<2x8x8xf32>
    %c0_27 = arith.constant 0 : index
    %c0_28 = arith.constant 0 : index
    %c0_29 = arith.constant 0 : index
    %66 = vector.load %arg10[%c0_27, %c0_28, %c0_29] : memref<2x8x8xf32, #tpu.memory_space<vmem>>, vector<2x8x8xf32>
    tpu.vector_store %arg10[%c0_27, %c0_28, %c0_29], %65 {strides = array<i32>} : memref<2x8x8xf32, #tpu.memory_space<vmem>>, vector<2x8x8xf32>,
    %67 = arith.truncf %61 : vector<16x32xf32> to vector<16x32xbf16>
    %cst_30 = arith.constant dense<0.000000e+00> : vector<16x32xf32>
    %68 = tpu.matmul %67, %23, %cst_30 {dimension_numbers = #tpu.dot_dimension_numbers<[1], [0], [0], [1], [0, 0, 1, 1], [], []>} : vector<16x32xbf16>, vector<32x32xbf16>, vector<16x32xf32> -> vector<16x32xf32>
    %69 = vector.broadcast %10 : vector<1x32xf32> to vector<16x32xf32>
    %70 = arith.addf %68, %69 : vector<16x32xf32>
    %71 = arith.addf %70, %1 : vector<16x32xf32>
    %cst_31 = arith.constant dense<0.000000e+00> : vector<16xf32>
    %72 = vector.multi_reduction <add>, %71, %cst_31 [1] : vector<16x32xf32> to vector<16xf32>
    %73 = vector.shape_cast %72 : vector<16xf32> to vector<16x1xf32>
    %cst_32 = arith.constant 3.200000e+01 : f32
    %74 = vector.broadcast %cst_32 : f32 to vector<16x1xf32>
    %75 = arith.divf %73, %74 : vector<16x1xf32>
    %76 = vector.broadcast %75 : vector<16x1xf32> to vector<16x32xf32>
    %77 = arith.subf %71, %76 : vector<16x32xf32>
    %78 = arith.mulf %77, %77 : vector<16x32xf32>
    %cst_33 = arith.constant dense<0.000000e+00> : vector<16xf32>
    %79 = vector.multi_reduction <add>, %78, %cst_33 [1] : vector<16x32xf32> to vector<16xf32>
    %80 = vector.shape_cast %79 : vector<16xf32> to vector<16x1xf32>
    %cst_34 = arith.constant 3.200000e+01 : f32
    %81 = vector.broadcast %cst_34 : f32 to vector<16x1xf32>
    %82 = arith.divf %80, %81 : vector<16x1xf32>
    %83 = vector.broadcast %75 : vector<16x1xf32> to vector<16x32xf32>
    %84 = arith.subf %71, %83 : vector<16x32xf32>
    %cst_35 = arith.constant 9.99999974E-6 : f32
    %85 = vector.broadcast %cst_35 : f32 to vector<16x1xf32>
    %86 = arith.addf %82, %85 : vector<16x1xf32>
    %87 = math.rsqrt %86 : vector<16x1xf32>
    %88 = vector.broadcast %87 : vector<16x1xf32> to vector<16x32xf32>
    %89 = arith.mulf %84, %88 : vector<16x32xf32>
    %90 = vector.broadcast %11 : vector<1x32xf32> to vector<16x32xf32>
    %91 = arith.mulf %89, %90 : vector<16x32xf32>
    %92 = vector.broadcast %12 : vector<1x32xf32> to vector<16x32xf32>
    %93 = arith.addf %91, %92 : vector<16x32xf32>
    %94 = arith.truncf %93 : vector<16x32xf32> to vector<16x32xbf16>
    %c0_36 = arith.constant 0 : index
    %c0_37 = arith.constant 0 : index
    %95 = vector.load %arg6[%c0_36, %c0_37] : memref<32x128xbf16, #tpu.memory_space<vmem>>, vector<32x128xbf16>
    %cst_38 = arith.constant dense<0.000000e+00> : vector<16x128xf32>
    %96 = tpu.matmul %94, %95, %cst_38 {dimension_numbers = #tpu.dot_dimension_numbers<[1], [0], [0], [1], [0, 0, 1, 1], [], []>} : vector<16x32xbf16>, vector<32x128xbf16>, vector<16x128xf32> -> vector<16x128xf32>
    %c0_39 = arith.constant 0 : index
    %c0_40 = arith.constant 0 : index
    %97 = vector.load %arg7[%c0_39, %c0_40] : memref<1x128xf32, #tpu.memory_space<vmem>>, vector<1x128xf32>
    %98 = vector.broadcast %97 : vector<1x128xf32> to vector<16x128xf32>
    %99 = arith.addf %96, %98 : vector<16x128xf32>
    %cst_41 = arith.constant 0.000000e+00 : f32
    %100 = vector.broadcast %cst_41 : f32 to vector<16x128xf32>
    %101 = arith.maximumf %99, %100 : vector<16x128xf32>
    %102 = arith.truncf %101 : vector<16x128xf32> to vector<16x128xbf16>
    %c0_42 = arith.constant 0 : index
    %c0_43 = arith.constant 0 : index
    %103 = vector.load %arg8[%c0_42, %c0_43] : memref<128x32xbf16, #tpu.memory_space<vmem>>, vector<128x32xbf16>
    %cst_44 = arith.constant dense<0.000000e+00> : vector<16x32xf32>
    %104 = tpu.matmul %102, %103, %cst_44 {dimension_numbers = #tpu.dot_dimension_numbers<[1], [0], [0], [1], [0, 0, 1, 1], [], []>} : vector<16x128xbf16>, vector<128x32xbf16>, vector<16x32xf32> -> vector<16x32xf32>
    %105 = vector.broadcast %15 : vector<1x32xf32> to vector<16x32xf32>
    %106 = arith.addf %104, %105 : vector<16x32xf32>
    %107 = arith.addf %106, %93 : vector<16x32xf32>
    %cst_45 = arith.constant dense<0.000000e+00> : vector<16xf32>
    %108 = vector.multi_reduction <add>, %107, %cst_45 [1] : vector<16x32xf32> to vector<16xf32>
    %109 = vector.shape_cast %108 : vector<16xf32> to vector<16x1xf32>
    %cst_46 = arith.constant 3.200000e+01 : f32
    %110 = vector.broadcast %cst_46 : f32 to vector<16x1xf32>
    %111 = arith.divf %109, %110 : vector<16x1xf32>
    %112 = vector.broadcast %111 : vector<16x1xf32> to vector<16x32xf32>
    %113 = arith.subf %107, %112 : vector<16x32xf32>
    %114 = arith.mulf %113, %113 : vector<16x32xf32>
    %cst_47 = arith.constant dense<0.000000e+00> : vector<16xf32>
    %115 = vector.multi_reduction <add>, %114, %cst_47 [1] : vector<16x32xf32> to vector<16xf32>
    %116 = vector.shape_cast %115 : vector<16xf32> to vector<16x1xf32>
    %cst_48 = arith.constant 3.200000e+01 : f32
    %117 = vector.broadcast %cst_48 : f32 to vector<16x1xf32>
    %118 = arith.divf %116, %117 : vector<16x1xf32>
    %119 = vector.broadcast %111 : vector<16x1xf32> to vector<16x32xf32>
    %120 = arith.subf %107, %119 : vector<16x32xf32>
    %cst_49 = arith.constant 9.99999974E-6 : f32
    %121 = vector.broadcast %cst_49 : f32 to vector<16x1xf32>
    %122 = arith.addf %118, %121 : vector<16x1xf32>
    %123 = math.rsqrt %122 : vector<16x1xf32>
    %124 = vector.broadcast %123 : vector<16x1xf32> to vector<16x32xf32>
    %125 = arith.mulf %120, %124 : vector<16x32xf32>
    %126 = vector.broadcast %13 : vector<1x32xf32> to vector<16x32xf32>
    %127 = arith.mulf %125, %126 : vector<16x32xf32>
    %128 = vector.broadcast %14 : vector<1x32xf32> to vector<16x32xf32>
    %129 = arith.addf %127, %128 : vector<16x32xf32>
    %130 = vector.shape_cast %129 : vector<16x32xf32> to vector<2x8x32xf32>
    %c0_50 = arith.constant 0 : index
    %c0_51 = arith.constant 0 : index
    %c0_52 = arith.constant 0 : index
    %131 = vector.load %arg9[%c0_50, %c0_51, %c0_52] : memref<2x8x32xf32, #tpu.memory_space<vmem>>, vector<2x8x32xf32>
    tpu.vector_store %arg9[%c0_50, %c0_51, %c0_52], %130 {strides = array<i32>} : memref<2x8x32xf32, #tpu.memory_space<vmem>>, vector<2x8x32xf32>,
    return
  }
  func.func @transform_0(%arg0: i32) -> (i32, i32, i32) {
    %c0_i32 = arith.constant 0 : i32
    %c0_i32_0 = arith.constant 0 : i32
    %c0_i32_1 = arith.constant 0 : i32
    return %arg0, %c0_i32, %c0_i32_0 : i32, i32, i32
  }
  func.func @transform_1(%arg0: i32) -> (i32, i32, i32) {
    %c0_i32 = arith.constant 0 : i32
    %c0_i32_0 = arith.constant 0 : i32
    %c0_i32_1 = arith.constant 0 : i32
    return %arg0, %c0_i32, %c0_i32_0 : i32, i32, i32
  }
  func.func @transform_2(%arg0: i32) -> (i32, i32, i32) {
    %c0_i32 = arith.constant 0 : i32
    %c0_i32_0 = arith.constant 0 : i32
    %c0_i32_1 = arith.constant 0 : i32
    return %arg0, %c0_i32, %c0_i32_0 : i32, i32, i32
  }
  func.func @transform_3(%arg0: i32) -> (i32, i32, i32) {
    %c0_i32 = arith.constant 0 : i32
    %c0_i32_0 = arith.constant 0 : i32
    %c0_i32_1 = arith.constant 0 : i32
    %c0_i32_2 = arith.constant 0 : i32
    return %c0_i32, %c0_i32_0, %c0_i32_1 : i32, i32, i32
  }
  func.func @transform_4(%arg0: i32) -> (i32, i32) {
    %c0_i32 = arith.constant 0 : i32
    %c0_i32_0 = arith.constant 0 : i32
    %c0_i32_1 = arith.constant 0 : i32
    return %c0_i32, %c0_i32_0 : i32, i32
  }
  func.func @transform_5(%arg0: i32) -> (i32, i32) {
    %c0_i32 = arith.constant 0 : i32
    %c0_i32_0 = arith.constant 0 : i32
    %c0_i32_1 = arith.constant 0 : i32
    return %c0_i32, %c0_i32_0 : i32, i32
  }
  func.func @transform_6(%arg0: i32) -> (i32, i32) {
    %c0_i32 = arith.constant 0 : i32
    %c0_i32_0 = arith.constant 0 : i32
    %c0_i32_1 = arith.constant 0 : i32
    return %c0_i32, %c0_i32_0 : i32, i32
  }
  func.func @transform_7(%arg0: i32) -> (i32, i32) {
    %c0_i32 = arith.constant 0 : i32
    %c0_i32_0 = arith.constant 0 : i32
    %c0_i32_1 = arith.constant 0 : i32
    return %c0_i32, %c0_i32_0 : i32, i32
  }
  func.func @transform_8(%arg0: i32) -> (i32, i32, i32) {
    %c0_i32 = arith.constant 0 : i32
    %c0_i32_0 = arith.constant 0 : i32
    %c0_i32_1 = arith.constant 0 : i32
    return %arg0, %c0_i32, %c0_i32_0 : i32, i32, i32
  }
  func.func @transform_9(%arg0: i32) -> (i32, i32, i32) {
    %c0_i32 = arith.constant 0 : i32
    %c0_i32_0 = arith.constant 0 : i32
    %c0_i32_1 = arith.constant 0 : i32
    return %arg0, %c0_i32, %c0_i32_0 : i32, i32, i32
  }
}

</mosaic_0001>

<bundles_post_ra>
// kernel: tpu_custom_call.1
= control target key start
LH: loop header
LB: loop body
LE: loop exit
PB: predicated region body
PF: predicated region fallthrough
CT: control target
= control target key end

     0   :  { %15 = vsyncpa [#allocation3], 0  ;;  %s3866_s0 = inlined_call_operand.vmem [shape: f32[2,8,32], index: 0, kind: input, shape index: {}]   ;;  %s3867_s1 = inlined_call_operand.vmem [shape: bf16[2,8,32], index: 1, kind: input, shape index: {}]   ;;  %s3868_s2 = inlined_call_operand.hbm [shape: bf16[2,8,32], index: 2, kind: input, shape index: {}]   ;;  %s3869_s3 = inlined_call_operand.vmem [shape: bf16[4,32,32], index: 3, kind: input, shape index: {}]   ;;  %s3870_s4 = inlined_call_operand.hbm [shape: f32[9,32], index: 4, kind: input, shape index: {}]   ;;  %s3871_s5 = inlined_call_operand.hbm [shape: bf16[32,128], index: 5, kind: input, shape index: {}]   ;;  %s3872_s6 = inlined_call_operand.vmem [shape: f32[1,128], index: 6, kind: input, shape index: {}]   ;;  %s3873_s7 = inlined_call_operand.vmem [shape: bf16[128,32], index: 7, kind: input, shape index: {}]   ;;  %s3874_s8 = inlined_call_operand.hbm [shape: f32[2,8,32], index: 8, kind: output, shape index: {0}]   ;;  %s3875_s9 = inlined_call_operand.hbm [shape: f32[2,8,8], index: 9, kind: output, shape index: {1}]  }
   0x1   :  { %16 = vsyncpa [#allocation6], 0 }
   0x2   :  { %17 = vsyncpa [#allocation4], 0 }
   0x3   :  { %18 = vsyncpa [#allocation10], 0  ;;  %s3205_s30 = smov [#allocation5]   ;;  %s3087_s13 = scalar_lea.hbm %s3870_s4, 256 }
   0x4   :  { %s42_s10 = sshll.u32 %s3205_s30, 4  ;;  %p3088_p0 = scmp.ne.s32.totalorder %s3870_s4, %s3087_s13  ;;  %s43_s10 = int_to_ptr.vmem [resolvable:$true] %s42_s10 }
   0x5   :  { %p3091_p1 = scmp.lt.u32.totalorder %s3087_s13, %s3870_s4 }
   0x7   :  { %p3093_p2 = pnand %p3091_p1, %p3088_p0 }
   0x9   :  { %3096 = shalt.err (!%p3093_p2)
}
   0xa   :  { %s3097_s18 = scalar_lea.vmem %s43_s10, 256  ;;  %p3102_p4 = scmp.lt.s32.totalorder %s43_s10, %s43_s10 }
   0xb   :  { %p3098_p3 = scmp.ne.s32.totalorder %s43_s10, %s3097_s18  ;;  %p3103_p5 = scmp.lt.s32.totalorder %s3097_s18, %s3097_s18 }
   0xd   :  { %p3104_p6 = por %p3103_p5, %p3102_p4 }
   0xf   :  { %p3105_p7 = pnand %p3104_p6, %p3098_p3 }
  0x11   :  { %3108 = shalt.err (!%p3105_p7)
}
  0x12   :  { %s3206_s19 = smov 128   ;;  %s3207_s20 = smov 8  }
  0x13   :  { %48 = dma.hbm_to_vmem [thread:$0]  %s3870_s4, 256, %s43_s10, [#allocation6], %s3206_s19, %s3206_s19, %s3207_s20  }
  0x14   :  { %s3208_s23 = smov [#allocation2]   ;;  %s3109_s27 = scalar_lea.hbm %s3868_s2, 128 }
  0x15   :  { %s28_s24 = sshll.u32 %s3208_s23, 4  ;;  %p3110_p8 = scmp.ne.s32.totalorder %s3868_s2, %s3109_s27  ;;  %s29_s24 = int_to_ptr.vmem [resolvable:$true] %s28_s24 }
  0x16   :  { %p3113_p9 = scmp.lt.u32.totalorder %s3109_s27, %s3868_s2 }
  0x18   :  { %p3115_p10 = pnand %p3113_p9, %p3110_p8 }
  0x1a   :  { %3118 = shalt.err (!%p3115_p10)
}
  0x1b   :  { %s3119_s12 = scalar_lea.vmem %s29_s24, 128  ;;  %p3124_p12 = scmp.lt.s32.totalorder %s29_s24, %s29_s24 }
  0x1c   :  { %p3120_p11 = scmp.ne.s32.totalorder %s29_s24, %s3119_s12  ;;  %p3125_p13 = scmp.lt.s32.totalorder %s3119_s12, %s3119_s12 }
  0x1e   :  { %p3126_p0 = por %p3125_p13, %p3124_p12 }
  0x20   :  { %p3127_p1 = pnand %p3126_p0, %p3120_p11 }
  0x22   :  { %3130 = shalt.err (!%p3127_p1)
}
  0x23   :  { %s3209_s4 = smov 64   ;;  %s3210_s10 = smov 4  }
  0x24   :  { %34 = dma.hbm_to_vmem [thread:$0]  %s3868_s2, 128, %s29_s24, [#allocation3], %s3209_s4, %s3209_s4, %s3210_s10  }
  0x25   :  { %s3211_s15 = smov [#allocation7]   ;;  %s3131_s21 = scalar_lea.hbm %s3871_s5, 256 }
  0x26   :  { %s54_s16 = sshll.u32 %s3211_s15, 4  ;;  %p3132_p2 = scmp.ne.s32.totalorder %s3871_s5, %s3131_s21  ;;  %s55_s16 = int_to_ptr.vmem [resolvable:$true] %s54_s16 }
  0x27   :  { %p3135_p3 = scmp.lt.u32.totalorder %s3131_s21, %s3871_s5 }
  0x29   :  { %p3137_p4 = pnand %p3135_p3, %p3132_p2 }
  0x2b   :  { %3140 = shalt.err (!%p3137_p4)
}
  0x2c   :  { %s3141_s27 = scalar_lea.vmem %s55_s16, 256  ;;  %p3146_p6 = scmp.lt.s32.totalorder %s55_s16, %s55_s16 }
  0x2d   :  { %p3142_p5 = scmp.ne.s32.totalorder %s55_s16, %s3141_s27  ;;  %p3147_p7 = scmp.lt.s32.totalorder %s3141_s27, %s3141_s27 }
  0x2f   :  { %p3148_p8 = por %p3147_p7, %p3146_p6 }
  0x31   :  { %p3149_p9 = pnand %p3148_p8, %p3142_p5 }
  0x33   :  { %3152 = shalt.err (!%p3149_p9)
}
  0x34   :  { %60 = dma.hbm_to_vmem [thread:$0]  %s3871_s5, 256, %s55_s16, [#allocation6], %s3209_s4, %s3209_s4, %s3210_s10  }
  0x35   :  { %3197 = dma.done.wait [#allocation3], 128  }
  0x36   :  { %3198 = vsyncadd [#allocation3], 4294967168 }
  0x37   :  { %3199 = dma.done.wait [#allocation6], 512  }
  0x38   :  { %3200 = vsyncadd [#allocation6], 4294966784  ;;  %v3212_v0 = vmov 0.0   ;;  %vm3213_vm0 = vmmov 0   ;;  %v3024_v1 = vld [vmem:[%s3869_s3] sm:$0xff]   ;;  %v3025_v2 = vld [vmem:[%s3869_s3 + $0x8] sm:$0xff]   ;;  %v103_v12 = vlaneseq }
  0x39   :  { %2835 = vmatprep.subr.bf16.mxu0 %v3212_v0  ;;  %2839 = vmatprep.mubr.msk.bf16.mxu0 %vm3213_vm0, %v3212_v0  ;;  %v75_v3 = vld [vmem:[%s3866_s0] sm:$0xff]  ;;  %v76_v4 = vld [vmem:[%s3866_s0 + $0x8] sm:$0xff]  ;;  %vm119_vm1 = vcmask 261120   ;;  %v3026_v6 = vld [vmem:[%s3869_s3 + $0x10] sm:$0xff]   ;;  %s3215_s26 = smov 120   ;;  %s3216_s27 = smov 112  }
  0x3a   :  { %2859 = vmatprep.subr.bf16.mxu1 %v3212_v0  ;;  %2861 = vmatprep.mubr.msk.bf16.mxu1 %vm3213_vm0, %v3212_v0  ;;  %v102_v5 = vpack.c.bf16 %v76_v4, %v75_v3  ;;  %v3027_v7 = vld [vmem:[%s3869_s3 + $0x18] sm:$0xff]   ;;  %v3028_v8 = vld [vmem:[%s3867_s1] sm:$0xff]   ;;  %v3030_v10 = vld [vmem:[%s3869_s3 + $0x28] sm:$0xff]   ;;  %v3360_v13 = vshrl.u32 %v103_v12, 7  ;;  %s3214_s1 = smov 104   ;;  %vm1186_vm2 = vcmask 64512  }
  0x3b   :  { %2836 = vmatpush3.bf16.msra.mxu0 %v3024_v1  ;;  %v3029_v9 = vld [vmem:[%s3869_s3 + $0x20] sm:$0xff]   ;;  %v81_v19 = vld [vmem:[#allocation5] sm:$0xff]  ;;  %v3217_v32 = vmov 1983009808   ;;  %v3218_v35 = vmov 1934713408  }
  0x3c   :  { %2837 = vmatprep.subr.bf16.mxu0 %v3212_v0  ;;  %v3031_v11 = vld [vmem:[#allocation2] sm:$0xff]   ;;  %v166_v16 = vsub.s32 1, %v3360_v13  ;;  %v105_v20 = vsub.s32 0, %v3360_v13  ;;  %v231_v31 = vsub.s32 2, %v3360_v13  ;;  %v317_v33 = vunpack.c.l.s4 %v3217_v32  ;;  %s3219_s5 = smov 16   ;;  %s3220_s30 = smov 24  }
  0x3d   :  { %v349_v36 = vunpack.c.l.s4 %v3218_v35  ;;  %vm1662_vm3 = vcmask 1043456   ;;  %vm2326_vm4 = vcmask 130048   ;;  %vm2329_vm5 = vcmask 195584  }
  0x3e   :  { %v167_v21 = vrot.slane %v81_v19, %v166_v16  ;;  %v106_v23 = vrot.slane %v81_v19, %v105_v20  ;;  %v232_v34 = vrot.slane %v81_v19, %v231_v31  ;;  %v318_v38 = vunpack.c.0.s8 %v317_v33 }
  0x3f   :  { %2838 = vmatpush3.bf16.msra.mxu0 %v3025_v2  ;;  %v350_v44 = vunpack.c.0.s8 %v349_v36 }
  0x40   :  { %2843 = vmatprep.subr.bf16.mxu0 %v3212_v0  ;;  %v3394_v47 = vsub.s32 %v318_v38, %v3360_v13 }
  0x41   :  { %v3397_v54 = vsub.s32 %v350_v44, %v3360_v13 }
  0x42   :  { %2840 = vmatmul.mubr.msk.bf16.vlgmr.msra.gmra.mrb[0].mxu0 %vm119_vm1, %v102_v5 }
  0x43   :  { %2844 = vmatpush3.bf16.msra.mxu0 %v3026_v6  ;;  %2847 = vmatprep.mubr.msk.bf16.mxu0 %vm3213_vm0, %v3212_v0 }
  0x44   :  { %2845 = vmatprep.subr.bf16.mxu0 %v3212_v0 }
  0x47   :  { %2846 = vmatpush3.bf16.msra.mxu0 %v3027_v7 }
  0x48   :  { %2851 = vmatprep.subr.bf16.mxu0 %v3212_v0 }
  0x4a   :  { %2848 = vmatmul.mubr.msk.bf16.vlgmr.msra.gmra.mrb[4].mxu0 %vm119_vm1, %v3028_v8 }
  0x4b   :  { %2855 = vmatprep.mubr.msk.bf16.mxu0 %vm3213_vm0, %v3212_v0  ;;  %2852 = vmatpush3.bf16.msra.mxu0 %v3029_v9 }
  0x4c   :  { %2853 = vmatprep.subr.bf16.mxu0 %v3212_v0 }
  0x4f   :  { %2854 = vmatpush3.bf16.msra.mxu0 %v3030_v10 }
  0x50   :  { %2865 = vmatprep.subr.bf16.mxu0 %v3212_v0 }
  0x52   :  { %2856 = vmatmul.mubr.msk.bf16.vlgmr.msra.gmra.mrb[8].mxu0 %vm119_vm1, %v3031_v11 }
  0x53   :  { %2867 = vmatprep.mubr.msk.bf16.mxu0 %vm3213_vm0, %v3212_v0 }
 0x115   :  { %v157_v14 = vpop.f32.mrb[0].mxu0 }
 0x116   :  { %v2841_v15 = vpop.f32.mrb[1].mxu0  ;;  %v158_v28 = vadd.f32 %v157_v14, %v106_v23 }
 0x117   :  { %v160_v17 = vpop.f32.mrb[2].mxu0 }
 0x118   :  { %v2842_v18 = vpop.f32.mrb[3].mxu0  ;;  %v3376_v30 = vadd.f32 %v160_v17, %v106_v23 }
 0x11d   :  { %v222_v22 = vpop.f32.mrb[4].mxu0 }
 0x11e   :  { %v223_v24 = vadd.f32 %v222_v22, %v167_v21  ;;  %v2849_v25 = vpop.f32.mrb[5].mxu0 }
 0x11f   :  { %v225_v26 = vpop.f32.mrb[6].mxu0 }
 0x120   :  { %600 = vrot.lane.b32.xlu1 %v223_v24, %s3214_s1  ;;  %588 = vrot.lane.b32.xlu0 %v223_v24, %s3215_s26  ;;  %v2850_v27 = vpop.f32.mrb[7].mxu0  ;;  %v3370_v29 = vadd.f32 %v225_v26, %v167_v21 }
 0x124   :  { %296 = vrot.lane.b32.xlu1 %v158_v28, %s3215_s26  ;;  %594 = vrot.lane.b32.xlu0 %v223_v24, %s3216_s27 }
 0x125   :  { %v287_v37 = vpop.f32.mrb[8].mxu0 }
 0x126   :  { %v3387_v39 = vadd.f32 %v287_v37, %v232_v34  ;;  %v2857_v40 = vpop.f32.mrb[9].mxu0 }
 0x127   :  { %v290_v43 = vpop.f32.mrb[10].mxu0 }
 0x128   :  { %308 = vrot.lane.b32.xlu1 %v158_v28, %s3214_s1  ;;  %302 = vrot.lane.b32.xlu0 %v158_v28, %s3216_s27  ;;  %v3391_v45 = vadd.f32 %v290_v43, %v232_v34  ;;  %v2858_v46 = vpop.f32.mrb[11].mxu0 }
 0x12c   :  { %596 = vrot.lane.b32.xlu1 %v3370_v29, %s3216_s27  ;;  %590 = vrot.lane.b32.xlu0 %v3370_v29, %s3215_s26 }
 0x130   :  { %298 = vrot.lane.b32.xlu1 %v3376_v30, %s3215_s26  ;;  %602 = vrot.lane.b32.xlu0 %v3370_v29, %s3214_s1 }
 0x134   :  { %310 = vrot.lane.b32.xlu1 %v3376_v30, %s3214_s1  ;;  %304 = vrot.lane.b32.xlu0 %v3376_v30, %s3216_s27 }
 0x138   :  { %880 = vrot.lane.b32.xlu1 %v3387_v39, %s3215_s26 }
 0x192   :  { %v601_v41 = vpop.permute.xlu1 %600  ;;  %v589_v42 = vpop.permute.xlu0 %588 }
 0x193   :  { %v622_v48 = vcombine.low %v589_v42, %v601_v41  ;;  %v623_v49 = vcombine.high %v589_v42, %v601_v41 }
 0x195   :  { %v630_v55 = vrot.slane %v622_v48, %v3394_v47  ;;  %v637_v56 = vrot.slane %v623_v49, %v3394_v47 }
 0x196   :  { %v297_v50 = vpop.permute.xlu1 %296  ;;  %v595_v51 = vpop.permute.xlu0 %594 }
 0x197   :  { %v606_v52 = vcombine.low %v223_v24, %v595_v51  ;;  %v607_v53 = vcombine.high %v223_v24, %v595_v51 }
 0x199   :  { %v614_v57 = vrot.slane %v606_v52, %v3394_v47  ;;  %v621_v58 = vrot.slane %v607_v53, %v3394_v47 }
 0x19a   :  { %v309_v59 = vpop.permute.xlu1 %308  ;;  %v303_v60 = vpop.permute.xlu0 %302 }
 0x19b   :  { %v638_v61 = vcombine.low %v614_v57, %v630_v55  ;;  %v639_v62 = vcombine.high %v614_v57, %v630_v55  ;;  %v654_v63 = vcombine.low %v621_v58, %v637_v56  ;;  %v655_v1 = vcombine.high %v621_v58, %v637_v56 }
 0x19c   :  { %v330_v2 = vcombine.low %v297_v50, %v309_v59  ;;  %v331_v3 = vcombine.high %v297_v50, %v309_v59  ;;  %v314_v4 = vcombine.low %v158_v28, %v303_v60  ;;  %v315_v5 = vcombine.high %v158_v28, %v303_v60 }
 0x19d   :  { %v646_v6 = vrot.slane %v638_v61, %v3397_v54  ;;  %v653_v7 = vrot.slane %v639_v62, %v3397_v54  ;;  %v662_v15 = vrot.slane %v654_v63, %v3397_v54  ;;  %v669_v16 = vrot.slane %v655_v1, %v3397_v54 }
 0x19e   :  { %v338_v8 = vrot.slane %v330_v2, %v3394_v47  ;;  %v345_v9 = vrot.slane %v331_v3, %v3394_v47  ;;  %v322_v10 = vrot.slane %v314_v4, %v3394_v47  ;;  %v329_v11 = vrot.slane %v315_v5, %v3394_v47  ;;  %v597_v12 = vpop.permute.xlu1 %596  ;;  %v591_v14 = vpop.permute.xlu0 %590 }
 0x19f   :  { %v742_v21 = vcombine.low %v646_v6, %v653_v7  ;;  %v2735_v22 = vcombine.high %v646_v6, %v653_v7  ;;  %v674_v23 = vcombine.low %v3370_v29, %v597_v12  ;;  %v675_v24 = vcombine.high %v3370_v29, %v597_v12 }
 0x1a0   :  { %v346_v17 = vcombine.low %v322_v10, %v338_v8  ;;  %v347_v18 = vcombine.high %v322_v10, %v338_v8  ;;  %v362_v19 = vcombine.low %v329_v11, %v345_v9  ;;  %v363_v20 = vcombine.high %v329_v11, %v345_v9 }
 0x1a1   :  { %v758_v33 = vcombine.low %v662_v15, %v669_v16  ;;  %v2736_v34 = vcombine.high %v662_v15, %v669_v16  ;;  %v682_v40 = vrot.slane %v674_v23, %v3394_v47  ;;  %v689_v29 = vrot.slane %v675_v24, %v3394_v47 }
 0x1a2   :  { %v354_v25 = vrot.slane %v346_v17, %v3397_v54  ;;  %v361_v26 = vrot.slane %v347_v18, %v3397_v54  ;;  %v370_v27 = vrot.slane %v362_v19, %v3397_v54  ;;  %v377_v28 = vrot.slane %v363_v20, %v3397_v54  ;;  %v299_v31 = vpop.permute.xlu1 %298  ;;  %v603_v32 = vpop.permute.xlu0 %602 }
 0x1a3   :  { %v690_v35 = vcombine.low %v591_v14, %v603_v32  ;;  %v691_v36 = vcombine.high %v591_v14, %v603_v32  ;;  %v3422_v48 = vrot.slane %v742_v21, %v3394_v47  ;;  %v3425_v49 = vrot.slane %v2735_v22, %v3394_v47 }
 0x1a4   :  { %v450_v37 = vcombine.low %v354_v25, %v361_v26  ;;  %v2731_v38 = vcombine.high %v354_v25, %v361_v26  ;;  %v466_v41 = vcombine.low %v370_v27, %v377_v28  ;;  %v2732_v42 = vcombine.high %v370_v27, %v377_v28 }
 0x1a5   :  { %v698_v43 = vrot.slane %v690_v35, %v3394_v47  ;;  %v705_v44 = vrot.slane %v691_v36, %v3394_v47  ;;  %v3428_v58 = vrot.slane %v758_v33, %v3394_v47  ;;  %v3431_v59 = vrot.slane %v2736_v34, %v3394_v47 }
 0x1a6   :  { %v311_v46 = vpop.permute.xlu1 %310  ;;  %v305_v55 = vpop.permute.xlu0 %304  ;;  %v3434_v60 = vrot.slane %v450_v37, %v3394_v47  ;;  %v3437_v61 = vrot.slane %v2731_v38, %v3394_v47  ;;  %v3440_v62 = vrot.slane %v466_v41, %v3394_v47  ;;  %v3443_v63 = vrot.slane %v2732_v42, %v3394_v47 }
 0x1a7   :  { %v706_v50 = vcombine.low %v682_v40, %v698_v43  ;;  %v707_v51 = vcombine.high %v682_v40, %v698_v43  ;;  %v722_v52 = vcombine.low %v689_v29, %v705_v44  ;;  %v723_v53 = vcombine.high %v689_v29, %v705_v44 }
 0x1a8   :  { %v398_v56 = vcombine.low %v299_v31, %v311_v46  ;;  %v399_v57 = vcombine.high %v299_v31, %v311_v46  ;;  %v382_v3 = vcombine.low %v3376_v30, %v305_v55  ;;  %v383_v4 = vcombine.high %v3376_v30, %v305_v55 }
 0x1a9   :  { %v714_v5 = vrot.slane %v706_v50, %v3397_v54  ;;  %v721_v6 = vrot.slane %v707_v51, %v3397_v54  ;;  %v730_v7 = vrot.slane %v722_v52, %v3397_v54  ;;  %v737_v8 = vrot.slane %v723_v53, %v3397_v54 }
 0x1aa   :  { %v406_v1 = vrot.slane %v398_v56, %v3394_v47  ;;  %v413_v2 = vrot.slane %v399_v57, %v3394_v47  ;;  %v390_v9 = vrot.slane %v382_v3, %v3394_v47  ;;  %v397_v10 = vrot.slane %v383_v4, %v3394_v47 }
 0x1ab   :  { %v774_v11 = vcombine.low %v3422_v48, %v3425_v49  ;;  %v790_v12 = vcombine.low %v3428_v58, %v3431_v59  ;;  %v482_v19 = vcombine.low %v3434_v60, %v3437_v61  ;;  %v498_v20 = vcombine.low %v3440_v62, %v3443_v63 }
 0x1ac   :  { %v414_v14 = vcombine.low %v390_v9, %v406_v1  ;;  %v415_v30 = vcombine.high %v390_v9, %v406_v1  ;;  %v430_v15 = vcombine.low %v397_v10, %v413_v2  ;;  %v431_v16 = vcombine.high %v397_v10, %v413_v2 }
 0x1ad   :  { %v782_v17 = vrot.slane %v774_v11, %v3397_v54  ;;  %v798_v18 = vrot.slane %v790_v12, %v3397_v54  ;;  %v810_v21 = vcombine.low %v714_v5, %v721_v6  ;;  %v2737_v22 = vcombine.high %v714_v5, %v721_v6 }
 0x1ae   :  { %v826_v23 = vcombine.low %v730_v7, %v737_v8  ;;  %v2738_v24 = vcombine.high %v730_v7, %v737_v8  ;;  %v422_v27 = vrot.slane %v414_v14, %v3397_v54  ;;  %v429_v28 = vrot.slane %v415_v30, %v3397_v54 }
 0x1af   :  { %v806_v25 = vcombine.low %v782_v17, %v798_v18  ;;  %v807_v26 = vcombine.high %v782_v17, %v798_v18  ;;  %v438_v31 = vrot.slane %v430_v15, %v3397_v54  ;;  %v445_v32 = vrot.slane %v431_v16, %v3397_v54 }
 0x1b0   :  { %v490_v35 = vrot.slane %v482_v19, %v3397_v54  ;;  %v506_v36 = vrot.slane %v498_v20, %v3397_v54  ;;  %v817_v37 = vrot.slane %v810_v21, %v3394_v47  ;;  %v825_v38 = vrot.slane %v2737_v22, %v3394_v47 }
 0x1b1   :  { %v1178_v33 = vpack.c.bf16 %v806_v25, %v806_v25  ;;  %v1179_v34 = vpack.c.bf16 %v807_v26, %v807_v26  ;;  %v833_v40 = vrot.slane %v826_v23, %v3394_v47  ;;  %v841_v29 = vrot.slane %v2738_v24, %v3394_v47 }
 0x1b2   :  { %v518_v43 = vcombine.low %v422_v27, %v429_v28  ;;  %v2733_v44 = vcombine.high %v422_v27, %v429_v28  ;;  %v534_v46 = vcombine.low %v438_v31, %v445_v32  ;;  %v514_v50 = vcombine.low %v490_v35, %v506_v36 }
 0x1b3   :  { %v1191_v41 = vsel %vm1186_vm2, %v1178_v33, 0  ;;  %v1237_v42 = vsel %vm1186_vm2, %v1179_v34, 0  ;;  %v775_v51 = vcombine.high %v3422_v48, %v3425_v49  ;;  %v791_v52 = vcombine.high %v3428_v58, %v3431_v59 }
 0x1b4   :  { %2860 = vmatpush3.bf16.xpose.msra.mxu1 %v1191_v41  ;;  %2866 = vmatpush3.bf16.xpose.msra.mxu0 %v1237_v42  ;;  %v2734_v53 = vcombine.high %v438_v31, %v445_v32  ;;  %v515_v55 = vcombine.high %v490_v35, %v506_v36  ;;  %v842_v56 = vcombine.low %v817_v37, %v825_v38 }
 0x1b5   :  { %2871 = vmatprep.subr.bf16.mxu1 %v3212_v0  ;;  %2877 = vmatprep.subr.bf16.mxu0 %v3212_v0  ;;  %v858_v57 = vcombine.low %v833_v40, %v841_v29  ;;  %v483_v1 = vcombine.high %v3434_v60, %v3437_v61  ;;  %v499_v2 = vcombine.high %v3440_v62, %v3443_v63 }
 0x1b6   :  { %v789_v3 = vrot.slane %v775_v51, %v3397_v54  ;;  %v805_v4 = vrot.slane %v791_v52, %v3397_v54  ;;  %v850_v48 = vrot.slane %v842_v56, %v3397_v54  ;;  %v525_v58 = vrot.slane %v518_v43, %v3394_v47 }
 0x1b7   :  { %v866_v49 = vrot.slane %v858_v57, %v3397_v54  ;;  %v1170_v59 = vpack.c.bf16 %v514_v50, %v514_v50  ;;  %v533_v7 = vrot.slane %v2733_v44, %v3394_v47  ;;  %v541_v60 = vrot.slane %v534_v46, %v3394_v47 }
 0x1b8   :  { %v808_v5 = vcombine.low %v789_v3, %v805_v4  ;;  %v809_v6 = vcombine.high %v789_v3, %v805_v4  ;;  %v549_v61 = vrot.slane %v2734_v53, %v3394_v47  ;;  %v1171_v62 = vpack.c.bf16 %v515_v55, %v515_v55 }
 0x1b9   :  { %v497_v9 = vrot.slane %v483_v1, %v3397_v54  ;;  %v513_v10 = vrot.slane %v499_v2, %v3397_v54  ;;  %v874_v11 = vcombine.low %v850_v48, %v866_v49  ;;  %v843_v12 = vcombine.high %v817_v37, %v825_v38 }
 0x1ba   :  { %v1180_v63 = vpack.c.bf16 %v808_v5, %v808_v5  ;;  %v1181_v8 = vpack.c.bf16 %v809_v6, %v809_v6  ;;  %v875_v15 = vcombine.high %v850_v48, %v866_v49  ;;  %v859_v16 = vcombine.high %v833_v40, %v841_v29 }
 0x1bb   :  { %2862 = vmatmul.mubr.msk.bf16.vlgmr.msra.gmra.mrb[0].mxu1 %vm1186_vm2, %v1170_v59  ;;  %2868 = vmatmul.mubr.msk.bf16.vlgmr.msra.gmra.mrb[12].mxu0 %vm1186_vm2, %v1171_v62  ;;  %v550_v17 = vcombine.low %v525_v58, %v533_v7  ;;  %v566_v18 = vcombine.low %v541_v60, %v549_v61  ;;  %v516_v19 = vcombine.low %v497_v9, %v513_v10 }
 0x1bc   :  { %2873 = vmatprep.mubr.msk.bf16.mxu1 %vm3213_vm0, %v3212_v0  ;;  %v1283_v14 = vsel %vm1186_vm2, %v1180_v63, 0  ;;  %v1329_v30 = vsel %vm1186_vm2, %v1181_v8, 0  ;;  %2879 = vmatprep.mubr.msk.bf16.mxu0 %vm3213_vm0, %v3212_v0  ;;  %v517_v20 = vcombine.high %v497_v9, %v513_v10  ;;  %v1182_v21 = vpack.c.bf16 %v874_v11, %v874_v11 }
 0x1bd   :  { %2872 = vmatpush3.bf16.xpose.msra.mxu1 %v1283_v14  ;;  %2878 = vmatpush3.bf16.xpose.msra.mxu0 %v1329_v30  ;;  %v1183_v22 = vpack.c.bf16 %v875_v15, %v875_v15  ;;  %v857_v23 = vrot.slane %v843_v12, %v3397_v54  ;;  %v873_v24 = vrot.slane %v859_v16, %v3397_v54 }
 0x1be   :  { %2883 = vmatprep.subr.bf16.mxu1 %v3212_v0  ;;  %2889 = vmatprep.subr.bf16.mxu0 %v3212_v0  ;;  %v1172_v25 = vpack.c.bf16 %v516_v19, %v516_v19  ;;  %v1173_v26 = vpack.c.bf16 %v517_v20, %v517_v20  ;;  %v558_v27 = vrot.slane %v550_v17, %v3397_v54  ;;  %v1375_v31 = vsel %vm1186_vm2, %v1182_v21, 0 }
 0x1bf   :  { %v574_v28 = vrot.slane %v566_v18, %v3397_v54  ;;  %v1421_v32 = vsel %vm1186_vm2, %v1183_v22, 0  ;;  %v876_v33 = vcombine.low %v857_v23, %v873_v24  ;;  %v877_v34 = vcombine.high %v857_v23, %v873_v24 }
 0x1c0   :  { %v551_v35 = vcombine.high %v525_v58, %v533_v7  ;;  %v567_v36 = vcombine.high %v541_v60, %v549_v61 }
 0x1c1   :  { %v582_v37 = vcombine.low %v558_v27, %v574_v28  ;;  %v583_v38 = vcombine.high %v558_v27, %v574_v28  ;;  %v1184_v40 = vpack.c.bf16 %v876_v33, %v876_v33  ;;  %v1185_v29 = vpack.c.bf16 %v877_v34, %v877_v34  ;;  %v881_v33 = vpop.permute.xlu1 %880 }
 0x1c2   :  { %v565_v43 = vrot.slane %v551_v35, %v3397_v54  ;;  %v581_v44 = vrot.slane %v567_v36, %v3397_v54 }
 0x1c3   :  { %v1174_v41 = vpack.c.bf16 %v582_v37, %v582_v37  ;;  %v1175_v42 = vpack.c.bf16 %v583_v38, %v583_v38  ;;  %v1467_v46 = vsel %vm1186_vm2, %v1184_v40, 0  ;;  %v1513_v50 = vsel %vm1186_vm2, %v1185_v29, 0 }
 0x1c4   :  { %2874 = vmatmul.mubr.msk.bf16.vlgmr.msra.gmra.mrb[4].mxu1 %vm1186_vm2, %v1172_v25  ;;  %2880 = vmatmul.mubr.msk.bf16.vlgmr.msra.gmra.mrb[16].mxu0 %vm1186_vm2, %v1173_v26  ;;  %v584_v51 = vcombine.low %v565_v43, %v581_v44  ;;  %v585_v52 = vcombine.high %v565_v43, %v581_v44 }
 0x1c5   :  { %2884 = vmatpush3.bf16.xpose.msra.mxu1 %v1375_v31  ;;  %2890 = vmatpush3.bf16.xpose.msra.mxu0 %v1421_v32 }
 0x1c6   :  { %2885 = vmatprep.mubr.msk.bf16.mxu1 %vm3213_vm0, %v3212_v0  ;;  %2891 = vmatprep.mubr.msk.bf16.mxu0 %vm3213_vm0, %v3212_v0  ;;  %v1176_v53 = vpack.c.bf16 %v584_v51, %v584_v51  ;;  %v1177_v55 = vpack.c.bf16 %v585_v52, %v585_v52 }
 0x1c7   :  { %2895 = vmatprep.subr.bf16.mxu1 %v3212_v0  ;;  %2901 = vmatprep.subr.bf16.mxu0 %v3212_v0 }
 0x1cc   :  { %2886 = vmatmul.mubr.msk.bf16.vlgmr.msra.gmra.mrb[8].mxu1 %vm1186_vm2, %v1174_v41  ;;  %2892 = vmatmul.mubr.msk.bf16.vlgmr.msra.gmra.mrb[20].mxu0 %vm1186_vm2, %v1175_v42 }
 0x1cd   :  { %2896 = vmatpush3.bf16.xpose.msra.mxu1 %v1467_v46  ;;  %2902 = vmatpush3.bf16.xpose.msra.mxu0 %v1513_v50 }
 0x1ce   :  { %2897 = vmatprep.mubr.msk.bf16.mxu1 %vm3213_vm0, %v3212_v0  ;;  %2903 = vmatprep.mubr.msk.bf16.mxu0 %vm3213_vm0, %v3212_v0 }
 0x1cf   :  { %2907 = vmatprep.subr.bf16.mxu1 %v3212_v0  ;;  %2913 = vmatprep.subr.bf16.mxu0 %v3212_v0 }
 0x1d4   :  { %2898 = vmatmul.mubr.msk.bf16.vlgmr.msra.gmra.mrb[12].mxu1 %vm1186_vm2, %v1176_v53  ;;  %2904 = vmatmul.mubr.msk.bf16.vlgmr.msra.gmra.mrb[24].mxu0 %vm1186_vm2, %v1177_v55 }
 0x1d5   :  { %2909 = vmatprep.mubr.msk.bf16.mxu1 %vm3213_vm0, %v3212_v0  ;;  %2915 = vmatprep.mubr.msk.bf16.mxu0 %vm3213_vm0, %v3212_v0 }
 0x28e   :  { %v1227_v56 = vpop.f32.mrb[0].mxu1  ;;  %v1273_v57 = vpop.f32.mrb[12].mxu0 }
 0x28f   :  { %v2863_v1 = vpop.f32.mrb[1].mxu1  ;;  %v1555_v2 = vsel %vm1186_vm2, %v1227_v56, -inf  ;;  %v2869_v3 = vpop.f32.mrb[13].mxu0  ;;  %v1558_v48 = vsel %vm1186_vm2, %v1273_v57, -inf }
 0x290   :  { %v1230_v4 = vpop.f32.mrb[2].mxu1  ;;  %1556 = vmax.xlane.f32.xlu0 %v1555_v2  ;;  %1559 = vmax.xlane.f32.xlu1 %v1558_v48  ;;  %v1276_v49 = vpop.f32.mrb[14].mxu0 }
 0x291   :  { %v2864_v58 = vpop.f32.mrb[3].mxu1  ;;  %v2870_v59 = vpop.f32.mrb[15].mxu0 }
 0x297   :  { %v1319_v5 = vpop.f32.mrb[4].mxu1  ;;  %v1365_v6 = vpop.f32.mrb[16].mxu0 }
 0x298   :  { %v2875_v7 = vpop.f32.mrb[5].mxu1  ;;  %v2881_v60 = vpop.f32.mrb[17].mxu0  ;;  %v1561_v61 = vsel %vm1186_vm2, %v1319_v5, -inf  ;;  %v1564_v10 = vsel %vm1186_vm2, %v1365_v6, -inf }
 0x299   :  { %v1322_v62 = vpop.f32.mrb[6].mxu1  ;;  %1562 = vmax.xlane.f32.xlu0 %v1561_v61  ;;  %v1368_v63 = vpop.f32.mrb[18].mxu0 }
 0x29a   :  { %v2876_v8 = vpop.f32.mrb[7].mxu1  ;;  %v2882_v9 = vpop.f32.mrb[19].mxu0 }
 0x29d   :  { %1565 = vmax.xlane.f32.xlu0 %v1564_v10 }
 0x29f   :  { %v1411_v11 = vpop.f32.mrb[8].mxu1  ;;  %v3543_v12 = vpop.f32.mrb[20].mxu0 }
 0x2a0   :  { %v2887_v14 = vpop.f32.mrb[9].mxu1  ;;  %v2893_v30 = vpop.f32.mrb[21].mxu0  ;;  %v1567_v15 = vsel %vm1186_vm2, %v1411_v11, -inf  ;;  %v1570_v16 = vsel %vm1186_vm2, %v3543_v12, -inf }
 0x2a1   :  { %v1414_v17 = vpop.f32.mrb[10].mxu1  ;;  %1568 = vmax.xlane.f32.xlu1 %v1567_v15  ;;  %1571 = vmax.xlane.f32.xlu0 %v1570_v16  ;;  %v1460_v18 = vpop.f32.mrb[22].mxu0 }
 0x2a2   :  { %v2888_v19 = vpop.f32.mrb[11].mxu1  ;;  %v2894_v20 = vpop.f32.mrb[23].mxu0 }
 0x2a7   :  { %v3548_v21 = vpop.f32.mrb[12].mxu1  ;;  %v3550_v22 = vpop.f32.mrb[24].mxu0 }
 0x2a8   :  { %v2899_v23 = vpop.f32.mrb[13].mxu1  ;;  %v2905_v24 = vpop.f32.mrb[25].mxu0  ;;  %v1573_v25 = vsel %vm1186_vm2, %v3548_v21, -inf  ;;  %v1576_v26 = vsel %vm1186_vm2, %v3550_v22, -inf }
 0x2a9   :  { %v1506_v27 = vpop.f32.mrb[14].mxu1  ;;  %1574 = vmax.xlane.f32.xlu1 %v1573_v25  ;;  %1577 = vmax.xlane.f32.xlu0 %v1576_v26  ;;  %v1552_v28 = vpop.f32.mrb[26].mxu0 }
 0x2aa   :  { %v2900_v31 = vpop.f32.mrb[15].mxu1  ;;  %v2906_v32 = vpop.f32.mrb[27].mxu0 }
 0x2ba   :  { %892 = vrot.lane.b32.xlu1 %v3387_v39, %s3214_s1 }
 0x2bf   :  { %886 = vrot.lane.b32.xlu0 %v3387_v39, %s3216_s27 }
 0x31d   :  { %v1557_v34 = vpop.xlane.xlu0 %1556  ;;  %v1560_v36 = vpop.xlane.xlu1 %1559 }
 0x31e   :  { %v1579_v35 = vsub.f32 %v1227_v56, %v1557_v34  ;;  %v1580_v37 = vsub.f32 %v1273_v57, %v1560_v36 }
 0x320   :  { %v1587_v38 = vmul.f32 1.442695, %v1579_v35  ;;  %v1589_v40 = vmul.f32 1.442695, %v1580_v37 }
 0x322   :  { %3044 = vpow2.f32 %v1587_v38 }
 0x323   :  { %3046 = vpow2.f32 %v1589_v40 }
 0x326   :  { %v1563_v29 = vpop.xlane.xlu0 %1562 }
 0x327   :  { %v1581_v41 = vsub.f32 %v1319_v5, %v1563_v29 }
 0x329   :  { %v1591_v42 = vmul.f32 1.442695, %v1581_v41 }
 0x32a   :  { %v1566_v43 = vpop.xlane.xlu0 %1565 }
 0x32b   :  { %3048 = vpow2.f32 %v1591_v42  ;;  %v1582_v46 = vsub.f32 %v1365_v6, %v1566_v43 }
 0x32c   :  { %v3560_v44 = vpop.eup %3044 }
 0x32d   :  { %v3562_v50 = vpop.eup %3046  ;;  %v1603_v51 = vsel %vm1186_vm2, %v3560_v44, 0.0  ;;  %v1593_v52 = vmul.f32 1.442695, %v1582_v46 }
 0x32e   :  { %1604 = vadd.xlane.f32.xlu1 %v1603_v51  ;;  %v1606_v53 = vsel %vm1186_vm2, %v3562_v50, 0.0  ;;  %v1569_v55 = vpop.xlane.xlu1 %1568  ;;  %v3568_v1 = vpop.xlane.xlu0 %1571 }
 0x32f   :  { %1607 = vadd.xlane.f32.xlu0 %v1606_v53  ;;  %3050 = vpow2.f32 %v1593_v52  ;;  %v1583_v56 = vsub.f32 %v1411_v11, %v1569_v55 }
 0x331   :  { %v1595_v57 = vmul.f32 1.442695, %v1583_v56  ;;  %v1584_v56 = vsub.f32 %v3543_v12, %v3568_v1 }
 0x333   :  { %3052 = vpow2.f32 %v1595_v57  ;;  %v1597_v57 = vmul.f32 1.442695, %v1584_v56 }
 0x335   :  { %v3570_v2 = vpop.eup %3048  ;;  %3054 = vpow2.f32 %v1597_v57 }
 0x336   :  { %v3572_v3 = vpop.xlane.xlu1 %1574  ;;  %v3574_v4 = vpop.xlane.xlu0 %1577  ;;  %v1609_v48 = vsel %vm1186_vm2, %v3570_v2, 0.0 }
 0x337   :  { %v1586_v49 = vsub.f32 %v3550_v22, %v3574_v4  ;;  %1610 = vadd.xlane.f32.xlu1 %v1609_v48  ;;  %v1585_v48 = vsub.f32 %v3548_v21, %v3572_v3 }
 0x339   :  { %v3580_v58 = vpop.eup %3050  ;;  %v1601_v12 = vmul.f32 1.442695, %v1586_v49 }
 0x33a   :  { %v893_v59 = vpop.permute.xlu1 %892  ;;  %v887_v5 = vpop.permute.xlu0 %886  ;;  %v1612_v6 = vsel %vm1186_vm2, %v3580_v58, 0.0 }
 0x33b   :  { %v914_v7 = vcombine.low %v881_v33, %v893_v59  ;;  %v915_v60 = vcombine.high %v881_v33, %v893_v59  ;;  %v898_v61 = vcombine.low %v3387_v39, %v887_v5  ;;  %1613 = vadd.xlane.f32.xlu0 %v1612_v6  ;;  %v899_v62 = vcombine.high %v3387_v39, %v887_v5 }
 0x33c   :  { %v1599_v59 = vmul.f32 1.442695, %v1585_v48 }
 0x33d   :  { %v3586_v63 = vpop.eup %3052  ;;  %v922_v8 = vrot.slane %v914_v7, %v3394_v47  ;;  %v929_v9 = vrot.slane %v915_v60, %v3394_v47  ;;  %v906_v10 = vrot.slane %v898_v61, %v3394_v47  ;;  %v913_v11 = vrot.slane %v899_v62, %v3394_v47 }
 0x33e   :  { %v1615_v14 = vsel %vm1186_vm2, %v3586_v63, 0.0  ;;  %3056 = vpow2.f32 %v1599_v59 }
 0x33f   :  { %v930_v30 = vcombine.low %v906_v10, %v922_v8  ;;  %v931_v15 = vcombine.high %v906_v10, %v922_v8  ;;  %1616 = vadd.xlane.f32.xlu0 %v1615_v14  ;;  %v946_v16 = vcombine.low %v913_v11, %v929_v9  ;;  %v947_v17 = vcombine.high %v913_v11, %v929_v9  ;;  %v3618_v5 = vpop.eup %3054 }
 0x340   :  { %v1618_v6 = vsel %vm1186_vm2, %v3618_v5, 0.0  ;;  %3058 = vpow2.f32 %v1601_v12 }
 0x341   :  { %v938_v39 = vrot.slane %v930_v30, %v3397_v54  ;;  %v945_v18 = vrot.slane %v931_v15, %v3397_v54  ;;  %v954_v19 = vrot.slane %v946_v16, %v3397_v54  ;;  %v961_v20 = vrot.slane %v947_v17, %v3397_v54 }
 0x343   :  { %v1034_v23 = vcombine.low %v938_v39, %v945_v18  ;;  %v2739_v24 = vcombine.high %v938_v39, %v945_v18  ;;  %v1050_v25 = vcombine.low %v954_v19, %v961_v20  ;;  %v2740_v26 = vcombine.high %v954_v19, %v961_v20 }
 0x345   :  { %v1041_v27 = vrot.slane %v1034_v23, %v3394_v47  ;;  %v1049_v28 = vrot.slane %v2739_v24, %v3394_v47  ;;  %v1057_v31 = vrot.slane %v1050_v25, %v3394_v47  ;;  %v1065_v32 = vrot.slane %v2740_v26, %v3394_v47 }
 0x347   :  { %v1066_v33 = vcombine.low %v1041_v27, %v1049_v28  ;;  %v1067_v34 = vcombine.high %v1041_v27, %v1049_v28  ;;  %v1082_v35 = vcombine.low %v1057_v31, %v1065_v32  ;;  %v1083_v36 = vcombine.high %v1057_v31, %v1065_v32 }
 0x348   :  { %888 = vrot.lane.b32.xlu1 %v3391_v45, %s3216_s27  ;;  %v3622_v7 = vpop.eup %3056 }
 0x349   :  { %v1074_v37 = vrot.slane %v1066_v33, %v3397_v54  ;;  %v1081_v38 = vrot.slane %v1067_v34, %v3397_v54  ;;  %v1090_v40 = vrot.slane %v1082_v35, %v3397_v54  ;;  %v1097_v29 = vrot.slane %v1083_v36, %v3397_v54 }
 0x34a   :  { %v1621_v60 = vsel %vm1186_vm2, %v3622_v7, 0.0  ;;  %v3631_v21 = vpop.eup %3058 }
 0x34b   :  { %v1098_v41 = vcombine.low %v1074_v37, %v1090_v40  ;;  %v1099_v42 = vcombine.high %v1074_v37, %v1090_v40  ;;  %v1100_v43 = vcombine.low %v1081_v38, %v1097_v29  ;;  %v1101_v46 = vcombine.high %v1081_v38, %v1097_v29 }
 0x34c   :  { %v1624_v1 = vsel %vm1186_vm2, %v3631_v21, 0.0 }
 0x34d   :  { %v1651_v51 = vpack.c.bf16 %v1098_v41, %v1098_v41  ;;  %v1652_v52 = vpack.c.bf16 %v1099_v42, %v1099_v42  ;;  %v1653_v11 = vpack.c.bf16 %v1100_v43, %v1100_v43  ;;  %v1654_v4 = vpack.c.bf16 %v1101_v46, %v1101_v46 }
 0x34f   :  { %v1664_v53 = vsel %vm1662_vm3, %v1651_v51, 0  ;;  %v1710_v55 = vsel %vm1662_vm3, %v1652_v52, 0  ;;  %v1756_v15 = vsel %vm1662_vm3, %v1653_v11, 0  ;;  %v1802_v16 = vsel %vm1662_vm3, %v1654_v4, 0 }
 0x350   :  { %2908 = vmatpush3.bf16.msra.mxu1 %v1664_v53  ;;  %2914 = vmatpush3.bf16.msra.mxu0 %v1710_v55 }
 0x351   :  { %2919 = vmatprep.subr.bf16.mxu1 %v3212_v0  ;;  %2925 = vmatprep.subr.bf16.mxu0 %v3212_v0 }
 0x355   :  { %882 = vrot.lane.b32.xlu0 %v3391_v45, %s3215_s26 }
 0x36c   :  { %1619 = vadd.xlane.f32.xlu1 %v1618_v6 }
 0x374   :  { %1622 = vadd.xlane.f32.xlu0 %v1621_v60 }
 0x37d   :  { %894 = vrot.lane.b32.xlu1 %v3391_v45, %s3214_s1 }
 0x3a1   :  { %1625 = vadd.xlane.f32.xlu1 %v1624_v1 }
 0x3bb   :  { %v1605_v3 = vpop.xlane.xlu1 %1604 }
 0x3bc   :  { %3060 = vrcp.f32 %v1605_v3  ;;  %v1608_v61 = vpop.xlane.xlu0 %1607 }
 0x3bd   :  { %3062 = vrcp.f32 %v1608_v61 }
 0x3c4   :  { %v1611_v62 = vpop.xlane.xlu1 %1610 }
 0x3c5   :  { %3064 = vrcp.f32 %v1611_v62 }
 0x3c6   :  { %v3061_v8 = vpop.eup %3060 }
 0x3c7   :  { %v3063_v9 = vpop.eup %3062  ;;  %v1635_v10 = vmul.f32 %v3061_v8, %v3560_v44 }
 0x3c8   :  { %v1636_v22 = vmul.f32 %v3063_v9, %v3562_v50  ;;  %v1614_v49 = vpop.xlane.xlu0 %1613  ;;  %v889_v31 = vpop.permute.xlu1 %888 }
 0x3c9   :  { %v1643_v14 = vpack.c.bf16 %v1635_v10, %v1635_v10  ;;  %3066 = vrcp.f32 %v1614_v49  ;;  %v2332_v17 = vsel %vm1186_vm2, %v1635_v10, 0.0  ;;  %v966_v33 = vcombine.low %v3391_v45, %v889_v31 }
 0x3ca   :  { %v1644_v30 = vpack.c.bf16 %v1636_v22, %v1636_v22  ;;  %v2333_v39 = vsel %vm1186_vm2, %v1636_v22, 0.0  ;;  %v967_v34 = vcombine.high %v3391_v45, %v889_v31 }
 0x3cb   :  { %2910 = vmatmul.mubr.msk.bf16.vlgmr.msra.gmra.mrb[16].mxu1 %vm1186_vm2, %v1643_v14  ;;  %v2334_v23 = vadd.f32 %v2333_v39, %v2332_v17  ;;  %v974_v40 = vrot.slane %v966_v33, %v3394_v47 }
 0x3cc   :  { %2916 = vmatmul.mubr.msk.bf16.vlgmr.msra.gmra.mrb[28].mxu0 %vm1186_vm2, %v1644_v30  ;;  %2920 = vmatpush3.bf16.msra.mxu1 %v1756_v15  ;;  %v981_v29 = vrot.slane %v967_v34, %v3394_v47 }
 0x3cd   :  { %2926 = vmatpush3.bf16.msra.mxu0 %v1802_v16  ;;  %2921 = vmatprep.mubr.msk.bf16.mxu1 %vm3213_vm0, %v3212_v0 }
 0x3ce   :  { %2927 = vmatprep.mubr.msk.bf16.mxu0 %vm3213_vm0, %v3212_v0  ;;  %2931 = vmatprep.subr.bf16.mxu1 %v3212_v0 }
 0x3cf   :  { %2937 = vmatprep.subr.bf16.mxu0 %v3212_v0  ;;  %v3065_v44 = vpop.eup %3064 }
 0x3d0   :  { %v1637_v50 = vmul.f32 %v3065_v44, %v3570_v2 }
 0x3d2   :  { %v1645_v18 = vpack.c.bf16 %v1637_v50, %v1637_v50  ;;  %v2335_v19 = vsel %vm1186_vm2, %v1637_v50, 0.0 }
 0x3d3   :  { %v3067_v20 = vpop.eup %3066  ;;  %v2336_v25 = vadd.f32 %v2335_v19, %v2334_v23 }
 0x3d4   :  { %v1638_v24 = vmul.f32 %v3067_v20, %v3580_v58  ;;  %2922 = vmatmul.mubr.msk.bf16.vlgmr.msra.gmra.mrb[20].mxu1 %vm1186_vm2, %v1645_v18  ;;  %v1617_v58 = vpop.xlane.xlu0 %1616 }
 0x3d5   :  { %2933 = vmatprep.mubr.msk.bf16.mxu1 %vm3213_vm0, %v3212_v0  ;;  %3068 = vrcp.f32 %v1617_v58 }
 0x3d6   :  { %v1646_v26 = vpack.c.bf16 %v1638_v24, %v1638_v24  ;;  %v2337_v2 = vsel %vm1186_vm2, %v1638_v24, 0.0 }
 0x3d7   :  { %v2338_v27 = vadd.f32 %v2337_v2, %v2336_v25 }
 0x3d8   :  { %2928 = vmatmul.mubr.msk.bf16.vlgmr.msra.gmra.mrb[32].mxu0 %vm1186_vm2, %v1646_v26  ;;  %v883_v35 = vpop.permute.xlu0 %882 }
 0x3d9   :  { %2939 = vmatprep.mubr.msk.bf16.mxu0 %vm3213_vm0, %v3212_v0  ;;  %v2346_v28 = vmul.f32 0.25, %v2338_v27 }
 0x3db   :  { %2348 = vst.msk [vmem:[#allocation9] sm:$0xff] %vm1186_vm2, %v2346_v28 }
 0x3df   :  { %v3069_v11 = vpop.eup %3068 }
 0x3e0   :  { %v1639_v17 = vmul.f32 %v3069_v11, %v3586_v63 }
 0x3e2   :  { %v1647_v26 = vpack.c.bf16 %v1639_v17, %v1639_v17 }
 0x3f9   :  { %v1620_v32 = vpop.xlane.xlu1 %1619 }
 0x3fa   :  { %3070 = vrcp.f32 %v1620_v32  ;;  %v2339_v32 = vsel %vm1186_vm2, %v1639_v17, 0.0 }
 0x3fd   :  { %v895_v36 = vpop.permute.xlu1 %894 }
 0x3fe   :  { %v982_v37 = vcombine.low %v883_v35, %v895_v36  ;;  %v983_v38 = vcombine.high %v883_v35, %v895_v36 }
 0x400   :  { %v990_v41 = vrot.slane %v982_v37, %v3394_v47  ;;  %v997_v42 = vrot.slane %v983_v38, %v3394_v47 }
 0x401   :  { %v1623_v61 = vpop.xlane.xlu0 %1622 }
 0x402   :  { %v998_v43 = vcombine.low %v974_v40, %v990_v41  ;;  %v999_v46 = vcombine.high %v974_v40, %v990_v41  ;;  %v1014_v51 = vcombine.low %v981_v29, %v997_v42  ;;  %v1015_v52 = vcombine.high %v981_v29, %v997_v42 }
 0x403   :  { %3072 = vrcp.f32 %v1623_v61 }
 0x404   :  { %v1006_v45 = vrot.slane %v998_v43, %v3397_v54  ;;  %v1013_v53 = vrot.slane %v999_v46, %v3397_v54  ;;  %v1022_v55 = vrot.slane %v1014_v51, %v3397_v54  ;;  %v1029_v56 = vrot.slane %v1015_v52, %v3397_v54  ;;  %v3071_v30 = vpop.eup %3070 }
 0x405   :  { %v1640_v39 = vmul.f32 %v3071_v30, %v3618_v5 }
 0x406   :  { %v1102_v57 = vcombine.low %v1006_v45, %v1013_v53  ;;  %v2741_v48 = vcombine.high %v1006_v45, %v1013_v53  ;;  %v1118_v59 = vcombine.low %v1022_v55, %v1029_v56  ;;  %v2742_v6 = vcombine.high %v1022_v55, %v1029_v56 }
 0x407   :  { %v1648_v2 = vpack.c.bf16 %v1640_v39, %v1640_v39 }
 0x408   :  { %v1109_v60 = vrot.slane %v1102_v57, %v3394_v47  ;;  %v1117_v12 = vrot.slane %v2741_v48, %v3394_v47  ;;  %v1125_v1 = vrot.slane %v1118_v59, %v3394_v47  ;;  %v1133_v3 = vrot.slane %v2742_v6, %v3394_v47 }
 0x40a   :  { %v1134_v62 = vcombine.low %v1109_v60, %v1117_v12  ;;  %v1150_v8 = vcombine.low %v1125_v1, %v1133_v3  ;;  %v1135_v9 = vcombine.high %v1109_v60, %v1117_v12  ;;  %v1151_v10 = vcombine.high %v1125_v1, %v1133_v3 }
 0x40c   :  { %v1142_v22 = vrot.slane %v1134_v62, %v3397_v54  ;;  %v1158_v4 = vrot.slane %v1150_v8, %v3397_v54  ;;  %v1149_v49 = vrot.slane %v1135_v9, %v3397_v54  ;;  %v1165_v14 = vrot.slane %v1151_v10, %v3397_v54 }
 0x40d   :  { %v3073_v27 = vpop.eup %3072 }
 0x40e   :  { %v1166_v15 = vcombine.low %v1142_v22, %v1158_v4  ;;  %v1167_v16 = vcombine.high %v1142_v22, %v1158_v4  ;;  %v1168_v44 = vcombine.low %v1149_v49, %v1165_v14  ;;  %v1169_v50 = vcombine.high %v1149_v49, %v1165_v14 }
 0x40f   :  { %v1641_v28 = vmul.f32 %v3073_v27, %v3622_v7  ;;  %v2340_v7 = vsel %vm1186_vm2, %v1640_v39, 0.0 }
 0x410   :  { %v1655_v18 = vpack.c.bf16 %v1166_v15, %v1166_v15  ;;  %v1656_v19 = vpack.c.bf16 %v1167_v16, %v1167_v16  ;;  %v1657_v24 = vpack.c.bf16 %v1168_v44, %v1168_v44  ;;  %v1658_v25 = vpack.c.bf16 %v1169_v50, %v1169_v50 }
 0x411   :  { %v1649_v31 = vpack.c.bf16 %v1641_v28, %v1641_v28  ;;  %v2342_v33 = vsel %vm1186_vm2, %v1641_v28, 0.0  ;;  %v2341_v35 = vadd.f32 %v2340_v7, %v2339_v32 }
 0x412   :  { %v1848_v20 = vsel %vm1662_vm3, %v1655_v18, 0  ;;  %v1894_v23 = vsel %vm1662_vm3, %v1656_v19, 0  ;;  %v1940_v63 = vsel %vm1662_vm3, %v1657_v24, 0  ;;  %v1986_v5 = vsel %vm1662_vm3, %v1658_v25, 0 }
 0x413   :  { %2932 = vmatpush3.bf16.msra.mxu1 %v1848_v20  ;;  %2938 = vmatpush3.bf16.msra.mxu0 %v1894_v23  ;;  %v2343_v37 = vadd.f32 %v2342_v33, %v2341_v35 }
 0x414   :  { %2943 = vmatprep.subr.bf16.mxu1 %v3212_v0  ;;  %2949 = vmatprep.subr.bf16.mxu0 %v3212_v0 }
 0x416   :  { %2934 = vmatmul.mubr.msk.bf16.vlgmr.msra.gmra.mrb[24].mxu1 %vm1186_vm2, %v1647_v26  ;;  %2940 = vmatmul.mubr.msk.bf16.vlgmr.msra.gmra.mrb[36].mxu0 %vm1186_vm2, %v1648_v2 }
 0x417   :  { %2944 = vmatpush3.bf16.msra.mxu1 %v1940_v63  ;;  %2950 = vmatpush3.bf16.msra.mxu0 %v1986_v5 }
 0x418   :  { %2945 = vmatprep.mubr.msk.bf16.mxu1 %vm3213_vm0, %v3212_v0  ;;  %2951 = vmatprep.mubr.msk.bf16.mxu0 %vm3213_vm0, %v3212_v0 }
 0x419   :  { %2955 = vmatprep.subr.bf16.mxu1 %v3212_v0  ;;  %2963 = vmatprep.subr.bf16.mxu0 %v3212_v0 }
 0x41e   :  { %2946 = vmatmul.mubr.msk.bf16.vlgmr.msra.gmra.mrb[28].mxu1 %vm1186_vm2, %v1649_v31 }
 0x41f   :  { %2959 = vmatprep.mubr.msk.bf16.mxu1 %vm3213_vm0, %v3212_v0 }
 0x42e   :  { %v1626_v58 = vpop.xlane.xlu1 %1625 }
 0x42f   :  { %3074 = vrcp.f32 %v1626_v58 }
 0x439   :  { %v3075_v34 = vpop.eup %3074 }
 0x43a   :  { %v1642_v36 = vmul.f32 %v3075_v34, %v3631_v21 }
 0x43c   :  { %v1650_v38 = vpack.c.bf16 %v1642_v36, %v1642_v36  ;;  %v2344_v40 = vsel %vm1186_vm2, %v1642_v36, 0.0 }
 0x43d   :  { %v2345_v29 = vadd.f32 %v2344_v40, %v2343_v37 }
 0x43e   :  { %2952 = vmatmul.mubr.msk.bf16.vlgmr.msra.gmra.mrb[40].mxu0 %vm1186_vm2, %v1650_v38 }
 0x43f   :  { %2967 = vmatprep.mubr.msk.bf16.mxu0 %vm3213_vm0, %v3212_v0  ;;  %v2347_v41 = vmul.f32 0.25, %v2345_v29 }
 0x441   :  { %2349 = vst.msk [vmem:[#allocation9 + $0x8] sm:$0xff] %vm1186_vm2, %v2347_v41 }
 0x49e   :  { %v1700_v42 = vpop.f32.mrb[16].mxu1 }
 0x49f   :  { %v1746_v43 = vpop.f32.mrb[28].mxu0  ;;  %v2911_v46 = vpop.f32.mrb[17].mxu1 }
 0x4a0   :  { %v2917_v51 = vpop.f32.mrb[29].mxu0  ;;  %v1703_v52 = vpop.f32.mrb[18].mxu1 }
 0x4a1   :  { %v1749_v45 = vpop.f32.mrb[30].mxu0  ;;  %v2912_v21 = vpop.f32.mrb[19].mxu1 }
 0x4a2   :  { %v2918_v53 = vpop.f32.mrb[31].mxu0 }
 0x4a7   :  { %v1792_v55 = vpop.f32.mrb[20].mxu1 }
 0x4a8   :  { %v2028_v56 = vcombine.low %v1700_v42, %v1792_v55  ;;  %v2029_v57 = vcombine.high %v1700_v42, %v1792_v55  ;;  %v2923_v48 = vpop.f32.mrb[21].mxu1 }
 0x4a9   :  { %v1795_v59 = vpop.f32.mrb[22].mxu1 }
 0x4aa   :  { %v2924_v6 = vpop.f32.mrb[23].mxu1  ;;  %v2036_v62 = vrot.slane %v2028_v56, %v3394_v47  ;;  %v2043_v8 = vrot.slane %v2029_v57, %v3394_v47 }
 0x4ab   :  { %v1838_v60 = vpop.f32.mrb[32].mxu0 }
 0x4ac   :  { %v2044_v12 = vcombine.low %v1746_v43, %v1838_v60  ;;  %v2045_v1 = vcombine.high %v1746_v43, %v1838_v60  ;;  %v2929_v3 = vpop.f32.mrb[33].mxu0 }
 0x4ad   :  { %v1841_v61 = vpop.f32.mrb[34].mxu0 }
 0x4ae   :  { %v2052_v9 = vrot.slane %v2044_v12, %v3394_v47  ;;  %v2059_v10 = vrot.slane %v2045_v1, %v3394_v47  ;;  %v2930_v11 = vpop.f32.mrb[35].mxu0 }
 0x4b0   :  { %v2060_v22 = vcombine.low %v2036_v62, %v2052_v9  ;;  %v2061_v4 = vcombine.high %v2036_v62, %v2052_v9  ;;  %v2076_v49 = vcombine.low %v2043_v8, %v2059_v10  ;;  %v2077_v14 = vcombine.high %v2043_v8, %v2059_v10 }
 0x4b2   :  { %v2068_v30 = vrot.slane %v2060_v22, %v3397_v54  ;;  %v2075_v15 = vrot.slane %v2061_v4, %v3397_v54  ;;  %v2084_v16 = vrot.slane %v2076_v49, %v3397_v54  ;;  %v2091_v44 = vrot.slane %v2077_v14, %v3397_v54 }
 0x4b4   :  { %v2164_v50 = vcombine.low %v2068_v30, %v2075_v15  ;;  %v2759_v17 = vcombine.high %v2068_v30, %v2075_v15  ;;  %v2180_v39 = vcombine.low %v2084_v16, %v2091_v44  ;;  %v2760_v18 = vcombine.high %v2084_v16, %v2091_v44  ;;  %v3032_v30 = vld [vmem:[%s3869_s3 + $0x30] sm:$0xff]  }
 0x4b5   :  { %2956 = vmatpush3.bf16.msra.mxu1 %v3032_v30  ;;  %v3034_v30 = vld [vmem:[#allocation7] sm:$0xff]  }
 0x4b6   :  { %v2171_v19 = vrot.slane %v2164_v50, %v3394_v47  ;;  %v2179_v20 = vrot.slane %v2759_v17, %v3394_v47  ;;  %v2187_v23 = vrot.slane %v2180_v39, %v3394_v47  ;;  %v2195_v24 = vrot.slane %v2760_v18, %v3394_v47  ;;  %2957 = vmatprep.subr.bf16.mxu1 %v3212_v0 }
 0x4b7   :  { %2964 = vmatpush3.bf16.msra.mxu0 %v3034_v30 }
 0x4b8   :  { %v2197_v25 = vcombine.high %v2171_v19, %v2179_v20  ;;  %v2213_v26 = vcombine.high %v2187_v23, %v2195_v24  ;;  %v2196_v2 = vcombine.low %v2171_v19, %v2179_v20  ;;  %v2212_v27 = vcombine.low %v2187_v23, %v2195_v24  ;;  %2965 = vmatprep.subr.bf16.mxu0 %v3212_v0 }
 0x4ba   :  { %v3720_v63 = vrot.slane %v2197_v25, %v3397_v54  ;;  %v3723_v5 = vrot.slane %v2213_v26, %v3397_v54  ;;  %v3726_v28 = vrot.slane %v2196_v2, %v3397_v54  ;;  %v3729_v31 = vrot.slane %v2212_v27, %v3397_v54  ;;  %v3033_v26 = vld [vmem:[%s3869_s3 + $0x38] sm:$0xff]  }
 0x4bb   :  { %2958 = vmatpush3.bf16.msra.mxu1 %v3033_v26 }
 0x4bc   :  { %v2230_v58 = vcombine.low %v3720_v63, %v3723_v5  ;;  %v2228_v7 = vcombine.low %v3726_v28, %v3729_v31  ;;  %v2229_v32 = vcombine.high %v3726_v28, %v3729_v31  ;;  %v2231_v33 = vcombine.high %v3720_v63, %v3723_v5  ;;  %2971 = vmatprep.subr.bf16.mxu1 %v3212_v0  ;;  %v3773_v31 = vld [vmem:[#allocation5] sm:$0xff] }
 0x4bd   :  { %v2353_v28 = vsub.s32 3, %v3360_v13 }
 0x4e9   :  { %v1884_v34 = vpop.f32.mrb[24].mxu1  ;;  %v1930_v35 = vpop.f32.mrb[36].mxu0 }
 0x4ea   :  { %v2935_v36 = vpop.f32.mrb[25].mxu1  ;;  %v2941_v37 = vpop.f32.mrb[37].mxu0 }
 0x4eb   :  { %v1887_v38 = vpop.f32.mrb[26].mxu1  ;;  %v1933_v40 = vpop.f32.mrb[38].mxu0 }
 0x4ec   :  { %v2936_v29 = vpop.f32.mrb[27].mxu1  ;;  %v2942_v41 = vpop.f32.mrb[39].mxu0 }
 0x4f1   :  { %v1976_v42 = vpop.f32.mrb[28].mxu1 }
 0x4f2   :  { %v2096_v43 = vcombine.low %v1884_v34, %v1976_v42  ;;  %v2097_v46 = vcombine.high %v1884_v34, %v1976_v42  ;;  %v2947_v51 = vpop.f32.mrb[29].mxu1 }
 0x4f3   :  { %v1979_v52 = vpop.f32.mrb[30].mxu1 }
 0x4f4   :  { %v2948_v45 = vpop.f32.mrb[31].mxu1  ;;  %v2104_v48 = vrot.slane %v2096_v43, %v3394_v47  ;;  %v2111_v59 = vrot.slane %v2097_v46, %v3394_v47 }
 0x511   :  { %v2022_v21 = vpop.f32.mrb[40].mxu0 }
 0x512   :  { %v2112_v53 = vcombine.low %v1930_v35, %v2022_v21  ;;  %v2113_v55 = vcombine.high %v1930_v35, %v2022_v21  ;;  %v2953_v56 = vpop.f32.mrb[41].mxu0 }
 0x513   :  { %v2025_v57 = vpop.f32.mrb[42].mxu0 }
 0x514   :  { %v2120_v6 = vrot.slane %v2112_v53, %v3394_v47  ;;  %v2127_v60 = vrot.slane %v2113_v55, %v3394_v47  ;;  %v2954_v12 = vpop.f32.mrb[43].mxu0 }
 0x515   :  { %v3086_v12 = vld [vmem:[%s3866_s0 + $0x8] sm:$0xff] }
 0x516   :  { %v2128_v1 = vcombine.low %v2104_v48, %v2120_v6  ;;  %v2129_v3 = vcombine.high %v2104_v48, %v2120_v6  ;;  %v2144_v61 = vcombine.low %v2111_v59, %v2127_v60  ;;  %v2145_v62 = vcombine.high %v2111_v59, %v2127_v60  ;;  %v3085_v59 = vld [vmem:[%s3866_s0] sm:$0xff] }
 0x518   :  { %v2136_v8 = vrot.slane %v2128_v1, %v3397_v54  ;;  %v2143_v9 = vrot.slane %v2129_v3, %v3397_v54  ;;  %v2152_v10 = vrot.slane %v2144_v61, %v3397_v54  ;;  %v2159_v11 = vrot.slane %v2145_v62, %v3397_v54 }
 0x51a   :  { %v2232_v22 = vcombine.low %v2136_v8, %v2143_v9  ;;  %v2761_v4 = vcombine.high %v2136_v8, %v2143_v9  ;;  %v2248_v49 = vcombine.low %v2152_v10, %v2159_v11  ;;  %v2762_v14 = vcombine.high %v2152_v10, %v2159_v11 }
 0x51c   :  { %v2239_v15 = vrot.slane %v2232_v22, %v3394_v47  ;;  %v2247_v16 = vrot.slane %v2761_v4, %v3394_v47  ;;  %v2255_v44 = vrot.slane %v2248_v49, %v3394_v47  ;;  %v2263_v50 = vrot.slane %v2762_v14, %v3394_v47 }
 0x51e   :  { %v2265_v17 = vcombine.high %v2239_v15, %v2247_v16  ;;  %v2281_v39 = vcombine.high %v2255_v44, %v2263_v50  ;;  %v2264_v18 = vcombine.low %v2239_v15, %v2247_v16  ;;  %v2280_v19 = vcombine.low %v2255_v44, %v2263_v50  ;;  %v3035_v15 = vld [vmem:[#allocation7 + $0x8] sm:$0xff]   ;;  %v3037_v44 = vld [vmem:[%s3873_s7 + $0x8] sm:$0xff]   ;;  %v3038_v50 = vld [vmem:[%s3873_s7 + $0x10] sm:$0xff]  }
 0x51f   :  { %2966 = vmatpush3.bf16.msra.mxu0 %v3035_v15  ;;  %v3036_v16 = vld [vmem:[%s3873_s7] sm:$0xff]  }
 0x520   :  { %v2279_v20 = vrot.slane %v2265_v17, %v3397_v54  ;;  %v2295_v23 = vrot.slane %v2281_v39, %v3397_v54  ;;  %v2272_v24 = vrot.slane %v2264_v18, %v3397_v54  ;;  %v2288_v25 = vrot.slane %v2280_v19, %v3397_v54  ;;  %v3039_v17 = vld [vmem:[%s3873_s7 + $0x18] sm:$0xff]   ;;  %v3040_v39 = vld [vmem:[%s3873_s7 + $0x20] sm:$0xff]   ;;  %v3041_v18 = vld [vmem:[%s3873_s7 + $0x28] sm:$0xff]  }
 0x522   :  { %v2298_v47 = vcombine.low %v2279_v20, %v2295_v23  ;;  %v2297_v2 = vcombine.high %v2272_v24, %v2288_v25  ;;  %v2296_v27 = vcombine.low %v2272_v24, %v2288_v25  ;;  %v2299_v63 = vcombine.high %v2279_v20, %v2295_v23 }
 0x524   :  { %v3014_v5 = vpack.i.bf16 %v2298_v47, %v2230_v58  ;;  %v3009_v34 = vpack.i.bf16 %v2297_v2, %v2229_v32  ;;  %v3019_v35 = vpack.i.bf16 %v2299_v63, %v2231_v33  ;;  %v2442_v47 = vsub.s32 4, %v3360_v13 }
 0x526   :  { %3015 = vrot.lane.b32.xlu1 %v3014_v5, %s3219_s5  ;;  %3010 = vrot.lane.b32.xlu0 %v3009_v34, %s3207_s20  ;;  %v2443_v2 = vrot.slane %v3773_v31, %v2442_v47 }
 0x52a   :  { %3020 = vrot.lane.b32.xlu0 %v3019_v35, %s3220_s30 }
 0x598   :  { %v3016_v54 = vpop.permute.xlu1 %3015  ;;  %v3011_v36 = vpop.permute.xlu0 %3010 }
 0x599   :  { %v3013_v37 = vunpack.i.h.bf16 %v3011_v36  ;;  %v3012_v38 = vunpack.i.l.bf16 %v3011_v36  ;;  %v3018_v40 = vunpack.i.h.bf16 %v3016_v54  ;;  %v3017_v29 = vunpack.i.l.bf16 %v3016_v54 }
 0x59b   :  { %v2324_v41 = vsel %vm1186_vm2, %v2228_v7, %v3012_v38  ;;  %v2325_v58 = vsel %vm1186_vm2, %v2296_v27, %v3013_v37  ;;  %v2354_v7 = vrot.slane %v3773_v31, %v2353_v28  ;;  %v2448_v27 = vsub.s32 5, %v3360_v13 }
 0x59c   :  { %v3021_v32 = vpop.permute.xlu0 %3020  ;;  %v2327_v43 = vsel %vm2326_vm4, %v2324_v41, %v3017_v29  ;;  %v2328_v46 = vsel %vm2326_vm4, %v2325_v58, %v3018_v40  ;;  %v3042_v41 = vld [vmem:[%s3873_s7 + $0x30] sm:$0xff]   ;;  %v3043_v58 = vld [vmem:[%s3873_s7 + $0x38] sm:$0xff]  }
 0x59d   :  { %v3023_v33 = vunpack.i.h.bf16 %v3021_v32  ;;  %v3022_v42 = vunpack.i.l.bf16 %v3021_v32  ;;  %v2449_v36 = vrot.slane %v3773_v31, %v2448_v27  ;;  %v2766_v32 = vld [vmem:[%s3872_s6] ss:$0 sm:$0xff]  ;;  %s3221_s6 = smov [#allocation9]  }
 0x59e   :  { %s2691_s7 = sshll.u32 %s3221_s6, 4  ;;  %s2692_s7 = int_to_ptr.vmem [resolvable:$true] %s2691_s7 }
 0x59f   :  { %v2330_v51 = vsel %vm2329_vm5, %v2327_v43, %v3022_v42  ;;  %v2331_v52 = vsel %vm2329_vm5, %v2328_v46, %v3023_v33  ;;  %s3153_s29 = scalar_lea.vmem %s2692_s7, 256  ;;  %p3158_p11 = scmp.lt.s32.totalorder %s2692_s7, %s2692_s7 }
 0x5a0   :  { %v2350_v45 = vpack.c.bf16 %v2331_v52, %v2330_v51  ;;  %p3154_p10 = scmp.ne.s32.totalorder %s2692_s7, %s3153_s29  ;;  %p3159_p12 = scmp.lt.s32.totalorder %s3153_s29, %s3153_s29 }
 0x5a2   :  { %2960 = vmatmul.mubr.msk.bf16.vlgmr.msra.gmra.mrb[32].mxu1 %vm119_vm1, %v2350_v45  ;;  %p3160_p13 = por %p3159_p12, %p3158_p11 }
 0x5a3   :  { %2987 = vmatprep.mubr.msk.bf16.mxu1 %vm3213_vm0, %v3212_v0  ;;  %2972 = vmatpush3.bf16.msra.mxu1 %v3036_v16 }
 0x5a4   :  { %2973 = vmatprep.subr.bf16.mxu1 %v3212_v0  ;;  %p3161_p0 = pnand %p3160_p13, %p3154_p10 }
 0x5a7   :  { %2974 = vmatpush3.bf16.msra.mxu1 %v3037_v44 }
 0x5a8   :  { %2975 = vmatprep.subr.bf16.mxu1 %v3212_v0 }
 0x5ab   :  { %2976 = vmatpush3.bf16.msra.mxu1 %v3038_v50 }
 0x5ac   :  { %2977 = vmatprep.subr.bf16.mxu1 %v3212_v0 }
 0x5af   :  { %2978 = vmatpush3.bf16.msra.mxu1 %v3039_v17 }
 0x5b0   :  { %2979 = vmatprep.subr.bf16.mxu1 %v3212_v0 }
 0x5b3   :  { %2980 = vmatpush3.bf16.msra.mxu1 %v3040_v39 }
 0x5b4   :  { %2981 = vmatprep.subr.bf16.mxu1 %v3212_v0 }
 0x5b7   :  { %2982 = vmatpush3.bf16.msra.mxu1 %v3041_v18 }
 0x5b8   :  { %2983 = vmatprep.subr.bf16.mxu1 %v3212_v0 }
 0x5bb   :  { %2984 = vmatpush3.bf16.msra.mxu1 %v3042_v41 }
 0x5bc   :  { %2985 = vmatprep.subr.bf16.mxu1 %v3212_v0 }
 0x5bf   :  { %2986 = vmatpush3.bf16.msra.mxu1 %v3043_v58 }
 0x675   :  { %v2404_v21 = vpop.f32.mrb[32].mxu1 }
 0x676   :  { %v2405_v53 = vadd.f32 %v2404_v21, %v2354_v7  ;;  %v2961_v55 = vpop.f32.mrb[33].mxu1  ;;  %v2770_v21 = vld [vmem:[#allocation5 + $0x8] ss:$0 sm:$0xff] }
 0x677   :  { %v2407_v56 = vpop.f32.mrb[34].mxu1 }
 0x678   :  { %v2408_v57 = vadd.f32 %v2407_v56, %v2354_v7  ;;  %v2962_v48 = vpop.f32.mrb[35].mxu1  ;;  %v2411_v6 = vadd.f32 %v3085_v59, %v2405_v53 }
 0x67a   :  { %v2413_v60 = vsel %vm119_vm1, %v2411_v6, 0.0  ;;  %v2412_v1 = vadd.f32 %v3086_v12, %v2408_v57 }
 0x67b   :  { %2414 = vadd.xlane.f32.xlu1 %v2413_v60 }
 0x67c   :  { %v2416_v3 = vsel %vm119_vm1, %v2412_v1, 0.0 }
 0x67d   :  { %2417 = vadd.xlane.f32.xlu0 %v2416_v3 }
 0x708   :  { %v2415_v61 = vpop.xlane.xlu1 %2414 }
 0x709   :  { %v2420_v62 = vmul.f32 0.03125, %v2415_v61 }
 0x70a   :  { %v2418_v8 = vpop.xlane.xlu0 %2417 }
 0x70b   :  { %v2422_v9 = vsub.f32 %v2411_v6, %v2420_v62  ;;  %v2421_v10 = vmul.f32 0.03125, %v2418_v8 }
 0x70d   :  { %v2423_v11 = vsub.f32 %v2412_v1, %v2421_v10  ;;  %v2424_v22 = vmul.f32 %v2422_v9, %v2422_v9 }
 0x70f   :  { %v2426_v4 = vsel %vm119_vm1, %v2424_v22, 0.0  ;;  %v2425_v49 = vmul.f32 %v2423_v11, %v2423_v11 }
 0x710   :  { %2427 = vadd.xlane.f32.xlu0 %v2426_v4 }
 0x711   :  { %v2429_v14 = vsel %vm119_vm1, %v2425_v49, 0.0 }
 0x712   :  { %2430 = vadd.xlane.f32.xlu1 %v2429_v14 }
 0x79d   :  { %v2428_v19 = vpop.xlane.xlu0 %2427 }
 0x79e   :  { %v2432_v20 = vmul.f32 0.03125, %v2428_v19 }
 0x79f   :  { %v2431_v23 = vpop.xlane.xlu1 %2430 }
 0x7a0   :  { %v2434_v24 = vadd.f32 1e-05, %v2432_v20  ;;  %v2433_v25 = vmul.f32 0.03125, %v2431_v23 }
 0x7a2   :  { %3076 = vrsqrt.f32 %v2434_v24  ;;  %v2435_v26 = vadd.f32 1e-05, %v2433_v25 }
 0x7a4   :  { %3078 = vrsqrt.f32 %v2435_v26 }
 0x7ac   :  { %v3077_v63 = vpop.eup %3076 }
 0x7ad   :  { %v2438_v5 = vmul.f32 %v3077_v63, %v2422_v9 }
 0x7ae   :  { %v3079_v34 = vpop.eup %3078 }
 0x7af   :  { %v2444_v35 = vmul.f32 %v2443_v2, %v2438_v5  ;;  %v2439_v54 = vmul.f32 %v3079_v34, %v2423_v11 }
 0x7b1   :  { %v2445_v37 = vmul.f32 %v2443_v2, %v2439_v54  ;;  %v2450_v38 = vadd.f32 %v2449_v36, %v2444_v35 }
 0x7b3   :  { %v2451_v40 = vadd.f32 %v2449_v36, %v2445_v37 }
 0x7b5   :  { %v2452_v29 = vpack.c.bf16 %v2451_v40, %v2450_v38 }
 0x7b7   :  { %2968 = vmatmul.mubr.msk.bf16.vlgmr.msra.gmra.mrb[44].mxu0 %vm119_vm1, %v2452_v29 }
 0x88a   :  { %v2513_v33 = vpop.f32.mrb[44].mxu0 }
 0x88b   :  { %v2514_v42 = vadd.f32 %v2766_v32, %v2513_v33  ;;  %v2969_v43 = vpop.f32.mrb[45].mxu0 }
 0x88c   :  { %v2516_v46 = vpop.f32.mrb[46].mxu0 }
 0x88d   :  { %v2517_v51 = vadd.f32 %v2766_v32, %v2516_v46  ;;  %v2970_v52 = vpop.f32.mrb[47].mxu0  ;;  %v2520_v45 = vmax.f32 %v2514_v42, 0.0 }
 0x88f   :  { %v2521_v28 = vmax.f32 %v2517_v51, 0.0 }
 0x891   :  { %v2522_v7 = vpack.c.bf16 %v2521_v28, %v2520_v45 }
 0x893   :  { %2988 = vmatmul.mubr.bf16.vlgmr.msra.gmra.mrb[36].mxu1 %v2522_v7 }
 0x966   :  { %v2625_v53 = vpop.f32.mrb[36].mxu1 }
 0x967   :  { %v2626_v55 = vadd.f32 %v2770_v21, %v2625_v53  ;;  %v2989_v56 = vpop.f32.mrb[37].mxu1 }
 0x968   :  { %v2628_v0 = vpop.f32.mrb[38].mxu1 }
 0x969   :  { %v2629_v57 = vadd.f32 %v2770_v21, %v2628_v0  ;;  %v2990_v48 = vpop.f32.mrb[39].mxu1  ;;  %v2632_v59 = vadd.f32 %v2626_v55, %v2450_v38 }
 0x96b   :  { %v2634_v6 = vsel %vm119_vm1, %v2632_v59, 0.0  ;;  %v2633_v60 = vadd.f32 %v2629_v57, %v2451_v40 }
 0x96c   :  { %2635 = vadd.xlane.f32.xlu0 %v2634_v6 }
 0x96d   :  { %v2637_v12 = vsel %vm119_vm1, %v2633_v60, 0.0 }
 0x96e   :  { %2638 = vadd.xlane.f32.xlu1 %v2637_v12 }
 0x9f9   :  { %v2636_v1 = vpop.xlane.xlu0 %2635 }
 0x9fa   :  { %v2640_v3 = vmul.f32 0.03125, %v2636_v1 }
 0x9fb   :  { %v2639_v61 = vpop.xlane.xlu1 %2638 }
 0x9fc   :  { %v2642_v62 = vsub.f32 %v2632_v59, %v2640_v3  ;;  %v2641_v8 = vmul.f32 0.03125, %v2639_v61 }
 0x9fe   :  { %v2643_v9 = vsub.f32 %v2633_v60, %v2641_v8  ;;  %v2644_v10 = vmul.f32 %v2642_v62, %v2642_v62 }
 0xa00   :  { %v2646_v11 = vsel %vm119_vm1, %v2644_v10, 0.0  ;;  %v2645_v22 = vmul.f32 %v2643_v9, %v2643_v9 }
 0xa01   :  { %2647 = vadd.xlane.f32.xlu0 %v2646_v11 }
 0xa02   :  { %v2649_v4 = vsel %vm119_vm1, %v2645_v22, 0.0 }
 0xa03   :  { %2650 = vadd.xlane.f32.xlu1 %v2649_v4 }
 0xa04   :  { %3164 = shalt.err (!%p3161_p0)
}
 0xa05   :  { %s3165_s3 = scalar_lea.hbm %s3875_s9, 256 }
 0xa06   :  { %p3166_p1 = scmp.ne.s32.totalorder %s3875_s9, %s3165_s3  ;;  %p3169_p2 = scmp.lt.u32.totalorder %s3165_s3, %s3875_s9 }
 0xa08   :  { %p3171_p3 = pnand %p3169_p2, %p3166_p1 }
 0xa0a   :  { %3174 = shalt.err (!%p3171_p3)
}
 0xa0b   :  { %2697 = dma.vmem_to_hbm [thread:$0]  %s2692_s7, 256, %s3875_s9, [#allocation10], %s3206_s19, %s3206_s19, %s3207_s20   ;;  %v2662_v50 = vsub.s32 6, %v3360_v13  ;;  %v2668_v17 = vsub.s32 7, %v3360_v13 }
 0xa0c   :  { %s3222_s9 = smov [#allocation8]  }
 0xa0d   :  { %v2663_v39 = vrot.slane %v3773_v31, %v2662_v50  ;;  %v2669_v20 = vrot.slane %v3773_v31, %v2668_v17  ;;  %s2679_s14 = sshll.u32 %s3222_s9, 4  ;;  %s2680_s14 = int_to_ptr.vmem [resolvable:$true] %s2679_s14 }
 0xa0e   :  { %s3175_s15 = scalar_lea.vmem %s2680_s14, 256  ;;  %p3180_p5 = scmp.lt.s32.totalorder %s2680_s14, %s2680_s14 }
 0xa0f   :  { %p3176_p4 = scmp.ne.s32.totalorder %s2680_s14, %s3175_s15  ;;  %p3181_p6 = scmp.lt.s32.totalorder %s3175_s15, %s3175_s15 }
 0xa11   :  { %p3182_p7 = por %p3181_p6, %p3180_p5 }
 0xa13   :  { %p3183_p8 = pnand %p3182_p7, %p3176_p4 }
 0xa8e   :  { %v2648_v49 = vpop.xlane.xlu0 %2647 }
 0xa8f   :  { %v2652_v14 = vmul.f32 0.03125, %v2648_v49 }
 0xa90   :  { %v2651_v30 = vpop.xlane.xlu1 %2650 }
 0xa91   :  { %v2654_v15 = vadd.f32 1e-05, %v2652_v14  ;;  %v2653_v16 = vmul.f32 0.03125, %v2651_v30 }
 0xa93   :  { %3080 = vrsqrt.f32 %v2654_v15  ;;  %v2655_v44 = vadd.f32 1e-05, %v2653_v16 }
 0xa95   :  { %3082 = vrsqrt.f32 %v2655_v44 }
 0xa9d   :  { %v3081_v18 = vpop.eup %3080 }
 0xa9e   :  { %v2658_v19 = vmul.f32 %v3081_v18, %v2642_v62 }
 0xa9f   :  { %v3083_v23 = vpop.eup %3082 }
 0xaa0   :  { %v2659_v24 = vmul.f32 %v3083_v23, %v2643_v9  ;;  %v2664_v25 = vmul.f32 %v2663_v39, %v2658_v19 }
 0xaa2   :  { %v2665_v26 = vmul.f32 %v2663_v39, %v2659_v24  ;;  %v2670_v47 = vadd.f32 %v2669_v20, %v2664_v25 }
 0xaa4   :  { %v2671_v2 = vadd.f32 %v2669_v20, %v2665_v26  ;;  %2672 = vst.msk [vmem:[#allocation8] sm:$0xff] %vm119_vm1, %v2670_v47 }
 0xaa6   :  { %2673 = vst.msk [vmem:[#allocation8 + $0x8] sm:$0xff] %vm119_vm1, %v2671_v2 }
 0xaa7   :  { %3186 = shalt.err (!%p3183_p8)
}
 0xaa8   :  { %s3187_s18 = scalar_lea.hbm %s3874_s8, 256 }
 0xaa9   :  { %p3188_p9 = scmp.ne.s32.totalorder %s3874_s8, %s3187_s18  ;;  %p3191_p10 = scmp.lt.u32.totalorder %s3187_s18, %s3874_s8 }
 0xaab   :  { %p3193_p11 = pnand %p3191_p10, %p3188_p9 }
 0xaad   :  { %3196 = shalt.err (!%p3193_p11)
}
 0xaae   :  { %2685 = dma.vmem_to_hbm [thread:$0]  %s2680_s14, 256, %s3874_s8, [#allocation4], %s3206_s19, %s3206_s19, %s3207_s20  }
 0xaaf   :  { %3201 = dma.done.wait [#allocation4], 256  }
 0xab0   :  { %3202 = vsyncadd [#allocation4], 4294967040 }
 0xab1   :  { %3203 = dma.done.wait [#allocation10], 256  }
 0xab2   :  { %3204 = vsyncadd [#allocation10], 4294967040 }
 0xab3   :  { %2704 = vsyncpa [#allocation3], 1 }
 0xab4   :  { %2705 = vsyncpa [#allocation6], 1 }
 0xab5   :  { %2706 = vsyncpa [#allocation4], 1 }
 0xab6   :  { %2707 = vsyncpa [#allocation10], 1 }

</bundles_post_ra>
